<compile_context>
chip_gen: v7x
topology: tpu7x:2x2x1
jax: 0.10.0
libtpu: 0.0.40
codegen_flags: <defaults>
</compile_context>

<pallas_src>
import jax
import jax.numpy as jnp
from jax.experimental import pallas as pl
from jax.experimental.pallas import tpu as pltpu

EPS = 1e-5
LANES = 128


# ----------------------------------------------------------------------------
# small helpers
# ----------------------------------------------------------------------------
def _bn_scale_bias(gamma, beta, mean, var):
    s = gamma / jnp.sqrt(var + EPS)
    return s, beta - mean * s


def _sigmoid(x):
    # exp goes to the EUP; approx reciprocal is a nearly-free EUP push.
    return pl.reciprocal(1.0 + jnp.exp(-x), approx=True)


def _im2col(x, kh, kw, stride, pad):
    # glue-side im2col (only used for the stride-2 conv1): (N,H,W,C) -> (N,Ho,Wo,kh*kw*C)
    n, h, w, c = x.shape
    hout = (h + 2 * pad - kh) // stride + 1
    wout = (w + 2 * pad - kw) // stride + 1
    xp = jnp.pad(x, ((0, 0), (pad, pad), (pad, pad), (0, 0)))
    cols = []
    for i in range(kh):
        for j in range(kw):
            cols.append(xp[:, i:i + stride * hout:stride, j:j + stride * wout:stride, :])
    return jnp.concatenate(cols, axis=-1)


def _conv_matrix(w2d, size, ksize):
    # Doubly-Toeplitz matrix C with vec(out) = C @ vec(in) for a stride-1 'same'
    # 2-D cross-correlation with a (ksize, ksize) kernel on a (size, size) map.
    r = jnp.arange(size)
    d = r[None, :] - r[:, None] + (ksize - 1) // 2          # (out, in) offsets
    valid = (d >= 0) & (d < ksize)
    dcl = jnp.clip(d, 0, ksize - 1)
    m = w2d[dcl[:, :, None, None], dcl[None, None, :, :]]   # (oh, ih, ow, iw)
    mask = valid[:, :, None, None] & valid[None, None, :, :]
    m = jnp.where(mask, m, 0.0)
    return jnp.transpose(m, (0, 2, 1, 3)).reshape(size * size, size * size)


# ----------------------------------------------------------------------------
# Kernel 1: BN + ReLU on a lane-dense (rows, 128) slab
# ----------------------------------------------------------------------------
def bn_relu_kernel(x_ref, s_ref, b_ref, o_ref):
    o_ref[...] = jnp.maximum(x_ref[...] * s_ref[...] + b_ref[...], 0.0)


def bn_relu_lane_dense(x_flat, s_tiled, b_tiled, num_blocks):
    rows = x_flat.shape[0]
    rb = rows // num_blocks
    return pl.pallas_call(
        bn_relu_kernel,
        grid=(num_blocks,),
        in_specs=[pl.BlockSpec((rb, LANES), lambda i: (i, 0)),
                  pl.BlockSpec((1, LANES), lambda i: (0, 0)),
                  pl.BlockSpec((1, LANES), lambda i: (0, 0))],
        out_specs=pl.BlockSpec((rb, LANES), lambda i: (i, 0)),
        out_shape=jax.ShapeDtypeStruct((rows, LANES), jnp.float32),
        compiler_params=pltpu.CompilerParams(dimension_semantics=("parallel",)),
    )(x_flat, s_tiled, b_tiled)


# ----------------------------------------------------------------------------
# Kernel 2: fused conv1+shortcut / BN2+ReLU / conv2 / channel gate / spatial gate
# ----------------------------------------------------------------------------
def _make_fused_kernel(hout, wout, planes):
    hw = hout * wout

    def kernel(a1_ref, wc_ref, s2_ref, b2_ref, w2t_ref,
               w1m_ref, b1m_ref, w2m_ref, b2m_ref, watt_ref,
               prec_ref, csp_ref, spb_ref,
               out_ref, catt_ref, satt_ref):
        f32 = jnp.float32
        bf16 = jnp.bfloat16

        # --- conv1 (3x3/s2) + 1x1/s2 shortcut: single bf16 MXU matmul (64-wide) ---
        both = jnp.dot(a1_ref[0], wc_ref[...], preferred_element_type=f32)  # (hw, 2*planes)
        conv1 = both[:, :planes]
        shortcut = both[:, planes:]

        # --- BN2 + ReLU (f32 elementwise) ---
        act2 = jnp.maximum(conv1 * s2_ref[...] + b2_ref[...], 0.0)          # (hw, planes)

        # --- conv2 (3x3/s1/p1): in-VMEM zero pad + 9 accumulating tap matmuls ---
        a2 = act2.reshape(hout, wout, planes)
        zc = jnp.zeros((hout, 1, planes), f32)
        zr = jnp.zeros((1, wout + 2, planes), f32)
        a2p = jnp.concatenate(
            [zr, jnp.concatenate([zc, a2, zc], axis=1), zr], axis=0)        # (h+2, w+2, C)
        x2 = jnp.zeros((hw, planes), f32)
        for t in range(9):
            ki, kj = t // 3, t % 3
            patch = a2p[ki:ki + hout, kj:kj + wout, :].reshape(hw, planes)
            x2 = x2 + jnp.dot(patch.astype(bf16), w2t_ref[t],
                              preferred_element_type=f32)

        # --- channel gate (f32) ---
        avg = jnp.mean(x2, axis=0, keepdims=True)                           # (1, planes)
        mx = jnp.max(x2, axis=0, keepdims=True)

        def mlp(v):
            h = jnp.maximum(
                jnp.dot(v, w1m_ref[...], preferred_element_type=f32) + b1m_ref[...],
                0.0)
            return jnp.dot(h, w2m_ref[...], preferred_element_type=f32) + b2m_ref[...]

        att = (mlp(avg) + mlp(mx)
               + jnp.dot(prec_ref[0], watt_ref[...], preferred_element_type=f32))
        catt_ref[0] = att
        xs = x2 * _sigmoid(att)                                             # (hw, planes)

        # --- spatial gate: ChannelPool + 7x7 conv as a Toeplitz matmul (K=2*hw) ---
        cmax = jnp.max(xs, axis=1, keepdims=True)                           # (hw, 1)
        cmean = jnp.mean(xs, axis=1, keepdims=True)                         # (hw, 1)
        spin = jnp.concatenate([cmax, cmean], axis=0)                       # (2*hw, 1)
        x_out = jnp.dot(csp_ref[...], spin, preferred_element_type=f32) + spb_ref[0]
        satt_ref[0] = x_out
        out_ref[0] = xs * _sigmoid(x_out) + shortcut

    return kernel


# ----------------------------------------------------------------------------
# Parameter init (same layout as the PyTorch module, eval-mode BN stats)
# ----------------------------------------------------------------------------
def init_params(key, in_planes=16, planes=32, reduction=16):
    hidden = planes // reduction
    keys = jax.random.split(key, 24)

    def n(i, shape, s=0.1):
        return (jax.random.normal(keys[i], shape) * s).astype(jnp.float32)

    def bn(i, c):
        g = (1.0 + 0.1 * jax.random.normal(keys[i], (c,))).astype(jnp.float32)
        b = n(i + 1, (c,))
        m = n(i + 2, (c,))
        v = jax.random.uniform(keys[i + 3], (c,), minval=0.5, maxval=1.5).astype(jnp.float32)
        return (g, b, m, v)

    p = {}
    p['bn1'] = bn(0, in_planes)
    p['conv1_w'] = n(4, (planes, in_planes, 3, 3))
    p['bn2'] = bn(5, planes)
    p['conv2_w'] = n(9, (planes, planes, 3, 3))
    p['shortcut_w'] = n(10, (planes, in_planes, 1, 1))
    p['mlp_w1'] = n(11, (hidden, planes))
    p['mlp_b1'] = n(12, (hidden,))
    p['mlp_w2'] = n(13, (planes, hidden))
    p['mlp_b2'] = n(14, (planes,))
    p['att_fc_w'] = n(15, (planes, in_planes))
    p['sp_conv_w'] = n(16, (1, 2, 7, 7))
    p['sp_bn'] = bn(17, 1)
    return p


# ----------------------------------------------------------------------------
# Forward pass (Pallas path)
# ----------------------------------------------------------------------------
def preact_block_forward(x0, pre_channel_att, pre_spatial_att, p, stride=2):
    f32, bf16 = jnp.float32, jnp.bfloat16
    n, cin, h, w = x0.shape
    planes = p['conv1_w'].shape[0]
    hout, wout = h // stride, w // stride
    hw = hout * wout
    assert LANES % cin == 0 and (n * h * w * cin) % LANES == 0
    assert hout == wout

    x = jnp.transpose(x0, (0, 2, 3, 1)).astype(f32)                     # NHWC

    # ---- BN1 + ReLU (lane-dense Pallas kernel) ----
    s1, b1 = _bn_scale_bias(*p['bn1'])
    rows = (n * h * w * cin) // LANES
    nblk = n if (rows % n == 0 and (rows // n) % 8 == 0) else 1
    act1 = bn_relu_lane_dense(
        x.reshape(rows, LANES),
        jnp.tile(s1, LANES // cin).reshape(1, LANES),
        jnp.tile(b1, LANES // cin).reshape(1, LANES),
        nblk,
    ).reshape(n, h, w, cin)

    # ---- glue: strided im2col for conv1 (stride 2, pad 1), bf16 MXU operand ----
    a1 = _im2col(act1, 3, 3, stride, 1).reshape(n, hw, 9 * cin).astype(bf16)

    # ---- fused weight [conv1 | shortcut-at-center-tap]: (9*cin, 2*planes) ----
    w1c = jnp.transpose(p['conv1_w'], (2, 3, 1, 0)).reshape(9 * cin, planes)
    w_sc = p['shortcut_w'].reshape(planes, cin).T
    wc = jnp.zeros((9 * cin, 2 * planes), f32)
    wc = wc.at[:, :planes].set(w1c).at[4 * cin:5 * cin, planes:].set(w_sc)
    wc = wc.astype(bf16)

    s2, b2 = _bn_scale_bias(*p['bn2'])
    s2 = s2.reshape(1, planes)
    b2 = b2.reshape(1, planes)
    w2t = jnp.transpose(p['conv2_w'], (2, 3, 1, 0)).reshape(9, planes, planes).astype(bf16)

    w1m = p['mlp_w1'].T                                                  # (planes, hidden)
    b1m = p['mlp_b1'].reshape(1, -1)
    w2m = p['mlp_w2'].T                                                  # (hidden, planes)
    b2m = p['mlp_b2'].reshape(1, -1)
    watt = p['att_fc_w'].T                                               # (cin, planes)
    prec = pre_channel_att.astype(f32).reshape(n, 1, cin)

    # ---- spatial 7x7 conv as a Toeplitz matmul with BN scale folded in ----
    s_sp, b_sp = _bn_scale_bias(*p['sp_bn'])
    cmaxm = _conv_matrix(p['sp_conv_w'][0, 0], hout, 7)
    cmeanm = _conv_matrix(p['sp_conv_w'][0, 1], hout, 7)
    csp = jnp.concatenate([cmaxm, cmeanm], axis=1) * s_sp[0]             # (hw, 2*hw)

    # 2x2 max-pool of the previous spatial attention + spatial BN bias (tiny glue)
    pre_sp = jnp.transpose(pre_spatial_att, (0, 2, 3, 1)).astype(f32)
    pre_pool = pre_sp.reshape(n, hout, 2, wout, 2).max(axis=(2, 4))
    spb = (pre_pool + b_sp[0]).reshape(n, hw, 1)

    kernel = _make_fused_kernel(hout, wout, planes)
    rep = lambda b: (0, 0)
    rep3 = lambda b: (0, 0, 0)
    per_b = lambda b: (b, 0, 0)
    out_flat, catt, satt = pl.pallas_call(
        kernel,
        grid=(n,),
        in_specs=[
            pl.BlockSpec((1, hw, 9 * cin), per_b),          # a1 (im2col of act1)
            pl.BlockSpec((9 * cin, 2 * planes), rep),       # [w1 | w_sc]
            pl.BlockSpec((1, planes), rep),                 # bn2 scale
            pl.BlockSpec((1, planes), rep),                 # bn2 bias
            pl.BlockSpec((9, planes, planes), rep3),        # conv2 per-tap weights
            pl.BlockSpec(w1m.shape, rep),                   # mlp w1
            pl.BlockSpec(b1m.shape, rep),                   # mlp b1
            pl.BlockSpec(w2m.shape, rep),                   # mlp w2
            pl.BlockSpec(b2m.shape, rep),                   # mlp b2
            pl.BlockSpec(watt.shape, rep),                  # att_fc weight
            pl.BlockSpec((1, 1, cin), per_b),               # previous channel att
            pl.BlockSpec((hw, 2 * hw), rep),                # spatial Toeplitz matrix
            pl.BlockSpec((1, hw, 1), per_b),                # pooled prev spatial att + bias
        ],
        out_specs=(pl.BlockSpec((1, hw, planes), per_b),
                   pl.BlockSpec((1, 1, planes), per_b),
                   pl.BlockSpec((1, hw, 1), per_b)),
        out_shape=(jax.ShapeDtypeStruct((n, hw, planes), f32),
                   jax.ShapeDtypeStruct((n, 1, planes), f32),
                   jax.ShapeDtypeStruct((n, hw, 1), f32)),
        compiler_params=pltpu.CompilerParams(dimension_semantics=("parallel",)),
    )(a1, wc, s2, b2, w2t, w1m, b1m, w2m, b2m, watt, prec, csp, spb)

    out0 = jnp.transpose(out_flat.reshape(n, hout, wout, planes), (0, 3, 1, 2))
    out1 = catt.reshape(n, planes)
    out2 = satt.reshape(n, hout, wout)[:, None, :, :]
    return out0, out1, out2


# ----------------------------------------------------------------------------
# Pure-JAX reference (mirrors the PyTorch forward, eval-mode BN)
# ----------------------------------------------------------------------------
def reference_forward(x0, pre_c, pre_s, p, stride=2):
    def bn(x, g, b, m, v):
        return ((x - m[None, :, None, None]) / jnp.sqrt(v[None, :, None, None] + EPS)
                * g[None, :, None, None] + b[None, :, None, None])

    def conv(x, w, s, pad):
        return jax.lax.conv_general_dilated(
            x, w, (s, s), [(pad, pad), (pad, pad)],
            dimension_numbers=('NCHW', 'OIHW', 'NCHW'),
            precision=jax.lax.Precision.HIGHEST)

    out = jax.nn.relu(bn(x0, *p['bn1']))
    shortcut = conv(out, p['shortcut_w'], stride, 0)
    out = conv(out, p['conv1_w'], stride, 1)
    out = conv(jax.nn.relu(bn(out, *p['bn2'])), p['conv2_w'], 1, 1)

    # channel gate
    avg = out.mean(axis=(2, 3))
    mx = out.max(axis=(2, 3))

    def mlp(v):
        h = jax.nn.relu(v @ p['mlp_w1'].T + p['mlp_b1'])
        return h @ p['mlp_w2'].T + p['mlp_b2']

    att = mlp(avg) + mlp(mx) + pre_c @ p['att_fc_w'].T
    xg = out * jax.nn.sigmoid(att)[:, :, None, None]

    # spatial gate
    comp = jnp.concatenate([xg.max(axis=1, keepdims=True),
                            xg.mean(axis=1, keepdims=True)], axis=1)
    sp = bn(conv(comp, p['sp_conv_w'], 1, 3), *p['sp_bn'])
    nb, _, hh, ww = sp.shape
    pre_pool = pre_s.reshape(nb, 1, hh, 2, ww, 2).max(axis=(3, 5))
    x_out = sp + pre_pool
    out0 = xg * jax.nn.sigmoid(x_out) + shortcut
    return out0, att, x_out


# ----------------------------------------------------------------------------
if __name__ == "__main__":
    key = jax.random.PRNGKey(0)
    kx, kc, ks, kp = jax.random.split(key, 4)

    # PreActBlock(in_planes=16, planes=32, stride=2); reduction_ratio=16
    x0 = jax.random.normal(kx, (2, 16, 16, 16), dtype=jnp.float32)        # x[0]
    pre_c = jax.random.normal(kc, (2, 16), dtype=jnp.float32)             # x[1]
    pre_s = jax.random.normal(ks, (2, 1, 16, 16), dtype=jnp.float32)      # x[2]
    params = init_params(kp, in_planes=16, planes=32, reduction=16)

    fwd = jax.jit(preact_block_forward)
    out0, out1, out2 = fwd(x0, pre_c, pre_s, params)
    jax.block_until_ready((out0, out1, out2))

    r0, r1, r2 = reference_forward(x0, pre_c, pre_s, params)
    assert out0.shape == (2, 32, 8, 8) and out1.shape == (2, 32) and out2.shape == (2, 1, 8, 8)
    # tolerance covers bf16 MXU operands (f32 accumulation) + approx reciprocal;
    # structural/layout errors would show up as O(1) differences.
    tol = dict(atol=2e-2, rtol=2e-2)
    assert jnp.allclose(out0, r0, **tol), float(jnp.max(jnp.abs(out0 - r0)))
    assert jnp.allclose(out1, r1, **tol), float(jnp.max(jnp.abs(out1 - r1)))
    assert jnp.allclose(out2, r2, **tol), float(jnp.max(jnp.abs(out2 - r2)))
    print("KERNEL_OK")
</pallas_src>

<mosaic_0001>
module attributes {stable_mosaic.version = 11 : i64} {
  func.func @bn_relu_kernel(%arg0: i32, %arg1: memref<32x128xf32, #tpu.memory_space<vmem>>, %arg2: memref<1x128xf32, #tpu.memory_space<vmem>>, %arg3: memref<1x128xf32, #tpu.memory_space<vmem>>, %arg4: memref<32x128xf32, #tpu.memory_space<vmem>>) attributes {dimension_semantics = [#tpu.dimension_semantics<parallel>], iteration_bounds = array<i64: 2>, scalar_prefetch = 0 : i64, scratch_operands = 0 : i64, tpu.core_type = #tpu.core_type<tc>, window_params = [{transform_indices = @transform_0, window_bounds = array<i64: 32, 128>}, {pipeline_mode = #tpu.pipeline_mode<synchronous>, transform_indices = @transform_1, window_bounds = array<i64: 1, 128>}, {pipeline_mode = #tpu.pipeline_mode<synchronous>, transform_indices = @transform_2, window_bounds = array<i64: 1, 128>}, {transform_indices = @transform_3, window_bounds = array<i64: 32, 128>}]} {
    %c0 = arith.constant 0 : index
    %c0_0 = arith.constant 0 : index
    %0 = vector.load %arg1[%c0, %c0_0] : memref<32x128xf32, #tpu.memory_space<vmem>>, vector<32x128xf32>
    %c0_1 = arith.constant 0 : index
    %c0_2 = arith.constant 0 : index
    %1 = vector.load %arg2[%c0_1, %c0_2] : memref<1x128xf32, #tpu.memory_space<vmem>>, vector<1x128xf32>
    %2 = vector.broadcast %1 : vector<1x128xf32> to vector<32x128xf32>
    %3 = arith.mulf %0, %2 : vector<32x128xf32>
    %c0_3 = arith.constant 0 : index
    %c0_4 = arith.constant 0 : index
    %4 = vector.load %arg3[%c0_3, %c0_4] : memref<1x128xf32, #tpu.memory_space<vmem>>, vector<1x128xf32>
    %5 = vector.broadcast %4 : vector<1x128xf32> to vector<32x128xf32>
    %6 = arith.addf %3, %5 : vector<32x128xf32>
    %cst = arith.constant 0.000000e+00 : f32
    %7 = vector.broadcast %cst : f32 to vector<32x128xf32>
    %8 = arith.maximumf %6, %7 : vector<32x128xf32>
    %c0_5 = arith.constant 0 : index
    %c0_6 = arith.constant 0 : index
    %9 = vector.load %arg4[%c0_5, %c0_6] : memref<32x128xf32, #tpu.memory_space<vmem>>, vector<32x128xf32>
    tpu.vector_store %arg4[%c0_5, %c0_6], %8 {strides = array<i32>} : memref<32x128xf32, #tpu.memory_space<vmem>>, vector<32x128xf32>,
    return
  }
  func.func @transform_0(%arg0: i32) -> (i32, i32) {
    %c0_i32 = arith.constant 0 : i32
    %c0_i32_0 = arith.constant 0 : i32
    return %arg0, %c0_i32 : i32, i32
  }
  func.func @transform_1(%arg0: i32) -> (i32, i32) {
    %c0_i32 = arith.constant 0 : i32
    %c0_i32_0 = arith.constant 0 : i32
    %c0_i32_1 = arith.constant 0 : i32
    return %c0_i32, %c0_i32_0 : i32, i32
  }
  func.func @transform_2(%arg0: i32) -> (i32, i32) {
    %c0_i32 = arith.constant 0 : i32
    %c0_i32_0 = arith.constant 0 : i32
    %c0_i32_1 = arith.constant 0 : i32
    return %c0_i32, %c0_i32_0 : i32, i32
  }
  func.func @transform_3(%arg0: i32) -> (i32, i32) {
    %c0_i32 = arith.constant 0 : i32
    %c0_i32_0 = arith.constant 0 : i32
    return %arg0, %c0_i32 : i32, i32
  }
}

module attributes {stable_mosaic.version = 11 : i64} {
  func.func @kernel(%arg0: i32, %arg1: memref<1x64x144xbf16, #tpu.memory_space<vmem>>, %arg2: memref<144x64xbf16, #tpu.memory_space<vmem>>, %arg3: memref<1x32xf32, #tpu.memory_space<vmem>>, %arg4: memref<1x32xf32, #tpu.memory_space<vmem>>, %arg5: memref<9x32x32xbf16, #tpu.memory_space<vmem>>, %arg6: memref<32x2xf32, #tpu.memory_space<vmem>>, %arg7: memref<1x2xf32, #tpu.memory_space<vmem>>, %arg8: memref<2x32xf32, #tpu.memory_space<vmem>>, %arg9: memref<1x32xf32, #tpu.memory_space<vmem>>, %arg10: memref<16x32xf32, #tpu.memory_space<vmem>>, %arg11: memref<1x1x16xf32, #tpu.memory_space<vmem>>, %arg12: memref<64x128xf32, #tpu.memory_space<vmem>>, %arg13: memref<1x64x1xf32, #tpu.memory_space<vmem>>, %arg14: memref<1x64x32xf32, #tpu.memory_space<vmem>>, %arg15: memref<1x1x32xf32, #tpu.memory_space<vmem>>, %arg16: memref<1x64x1xf32, #tpu.memory_space<vmem>>) attributes {dimension_semantics = [#tpu.dimension_semantics<parallel>], iteration_bounds = array<i64: 2>, scalar_prefetch = 0 : i64, scratch_operands = 0 : i64, tpu.core_type = #tpu.core_type<tc>, window_params = [{transform_indices = @transform_0, window_bounds = array<i64: 1, 64, 144>}, {pipeline_mode = #tpu.pipeline_mode<synchronous>, transform_indices = @transform_1, window_bounds = array<i64: 144, 64>}, {pipeline_mode = #tpu.pipeline_mode<synchronous>, transform_indices = @transform_2, window_bounds = array<i64: 1, 32>}, {pipeline_mode = #tpu.pipeline_mode<synchronous>, transform_indices = @transform_3, window_bounds = array<i64: 1, 32>}, {pipeline_mode = #tpu.pipeline_mode<synchronous>, transform_indices = @transform_4, window_bounds = array<i64: 9, 32, 32>}, {pipeline_mode = #tpu.pipeline_mode<synchronous>, transform_indices = @transform_5, window_bounds = array<i64: 32, 2>}, {pipeline_mode = #tpu.pipeline_mode<synchronous>, transform_indices = @transform_6, window_bounds = array<i64: 1, 2>}, {pipeline_mode = #tpu.pipeline_mode<synchronous>, transform_indices = @transform_7, window_bounds = array<i64: 2, 32>}, {pipeline_mode = #tpu.pipeline_mode<synchronous>, transform_indices = @transform_8, window_bounds = array<i64: 1, 32>}, {pipeline_mode = #tpu.pipeline_mode<synchronous>, transform_indices = @transform_9, window_bounds = array<i64: 16, 32>}, {transform_indices = @transform_10, window_bounds = array<i64: 1, 1, 16>}, {pipeline_mode = #tpu.pipeline_mode<synchronous>, transform_indices = @transform_11, window_bounds = array<i64: 64, 128>}, {transform_indices = @transform_12, window_bounds = array<i64: 1, 64, 1>}, {transform_indices = @transform_13, window_bounds = array<i64: 1, 64, 32>}, {transform_indices = @transform_14, window_bounds = array<i64: 1, 1, 32>}, {transform_indices = @transform_15, window_bounds = array<i64: 1, 64, 1>}]} {
    %c0 = arith.constant 0 : index
    %c0_0 = arith.constant 0 : index
    %c0_1 = arith.constant 0 : index
    %0 = vector.load %arg1[%c0, %c0_0, %c0_1] : memref<1x64x144xbf16, #tpu.memory_space<vmem>>, vector<1x64x144xbf16>
    %1 = vector.shape_cast %0 : vector<1x64x144xbf16> to vector<64x144xbf16>
    %c0_2 = arith.constant 0 : index
    %c0_3 = arith.constant 0 : index
    %2 = vector.load %arg2[%c0_2, %c0_3] : memref<144x64xbf16, #tpu.memory_space<vmem>>, vector<144x64xbf16>
    %cst = arith.constant dense<0.000000e+00> : vector<64x64xf32>
    %3 = tpu.matmul %1, %2, %cst {dimension_numbers = #tpu.dot_dimension_numbers<[1], [0], [0], [1], [0, 0, 1, 1], [], []>} : vector<64x144xbf16>, vector<144x64xbf16>, vector<64x64xf32> -> vector<64x64xf32>
    %4 = vector.extract_strided_slice %3 {offsets = [0, 0], sizes = [64, 32], strides = [1, 1]} : vector<64x64xf32> to vector<64x32xf32>
    %5 = vector.extract_strided_slice %3 {offsets = [0, 32], sizes = [64, 32], strides = [1, 1]} : vector<64x64xf32> to vector<64x32xf32>
    %c0_4 = arith.constant 0 : index
    %c0_5 = arith.constant 0 : index
    %6 = vector.load %arg3[%c0_4, %c0_5] : memref<1x32xf32, #tpu.memory_space<vmem>>, vector<1x32xf32>
    %7 = vector.broadcast %6 : vector<1x32xf32> to vector<64x32xf32>
    %8 = arith.mulf %4, %7 : vector<64x32xf32>
    %c0_6 = arith.constant 0 : index
    %c0_7 = arith.constant 0 : index
    %9 = vector.load %arg4[%c0_6, %c0_7] : memref<1x32xf32, #tpu.memory_space<vmem>>, vector<1x32xf32>
    %10 = vector.broadcast %9 : vector<1x32xf32> to vector<64x32xf32>
    %11 = arith.addf %8, %10 : vector<64x32xf32>
    %cst_8 = arith.constant 0.000000e+00 : f32
    %12 = vector.broadcast %cst_8 : f32 to vector<64x32xf32>
    %13 = arith.maximumf %11, %12 : vector<64x32xf32>
    %14 = vector.shape_cast %13 : vector<64x32xf32> to vector<8x8x32xf32>
    %cst_9 = arith.constant 0.000000e+00 : f32
    %15 = vector.broadcast %cst_9 : f32 to vector<8x1x32xf32>
    %cst_10 = arith.constant 0.000000e+00 : f32
    %16 = vector.broadcast %cst_10 : f32 to vector<1x10x32xf32>
    %17 = tpu.concatenate %15, %14, %15 in 1 : vector<8x1x32xf32>, vector<8x8x32xf32>, vector<8x1x32xf32> -> vector<8x10x32xf32>
    %18 = tpu.concatenate %16, %17, %16 in 0 : vector<1x10x32xf32>, vector<8x10x32xf32>, vector<1x10x32xf32> -> vector<10x10x32xf32>
    %cst_11 = arith.constant 0.000000e+00 : f32
    %19 = vector.broadcast %cst_11 : f32 to vector<64x32xf32>
    %20 = vector.extract_strided_slice %18 {offsets = [0, 0, 0], sizes = [8, 8, 32], strides = [1, 1, 1]} : vector<10x10x32xf32> to vector<8x8x32xf32>
    %21 = vector.shape_cast %20 : vector<8x8x32xf32> to vector<64x32xf32>
    %22 = arith.truncf %21 : vector<64x32xf32> to vector<64x32xbf16>
    %c0_12 = arith.constant 0 : index
    %c0_13 = arith.constant 0 : index
    %c0_14 = arith.constant 0 : index
    %23 = vector.load %arg5[%c0_12, %c0_13, %c0_14] : memref<9x32x32xbf16, #tpu.memory_space<vmem>>, vector<1x32x32xbf16>
    %24 = vector.shape_cast %23 : vector<1x32x32xbf16> to vector<32x32xbf16>
    %cst_15 = arith.constant dense<0.000000e+00> : vector<64x32xf32>
    %25 = tpu.matmul %22, %24, %cst_15 {dimension_numbers = #tpu.dot_dimension_numbers<[1], [0], [0], [1], [0, 0, 1, 1], [], []>} : vector<64x32xbf16>, vector<32x32xbf16>, vector<64x32xf32> -> vector<64x32xf32>
    %26 = arith.addf %19, %25 : vector<64x32xf32>
    %27 = vector.extract_strided_slice %18 {offsets = [0, 1, 0], sizes = [8, 8, 32], strides = [1, 1, 1]} : vector<10x10x32xf32> to vector<8x8x32xf32>
    %28 = vector.shape_cast %27 : vector<8x8x32xf32> to vector<64x32xf32>
    %29 = arith.truncf %28 : vector<64x32xf32> to vector<64x32xbf16>
    %c1 = arith.constant 1 : index
    %c0_16 = arith.constant 0 : index
    %c0_17 = arith.constant 0 : index
    %30 = vector.load %arg5[%c1, %c0_16, %c0_17] : memref<9x32x32xbf16, #tpu.memory_space<vmem>>, vector<1x32x32xbf16>
    %31 = vector.shape_cast %30 : vector<1x32x32xbf16> to vector<32x32xbf16>
    %cst_18 = arith.constant dense<0.000000e+00> : vector<64x32xf32>
    %32 = tpu.matmul %29, %31, %cst_18 {dimension_numbers = #tpu.dot_dimension_numbers<[1], [0], [0], [1], [0, 0, 1, 1], [], []>} : vector<64x32xbf16>, vector<32x32xbf16>, vector<64x32xf32> -> vector<64x32xf32>
    %33 = arith.addf %26, %32 : vector<64x32xf32>
    %34 = vector.extract_strided_slice %18 {offsets = [0, 2, 0], sizes = [8, 8, 32], strides = [1, 1, 1]} : vector<10x10x32xf32> to vector<8x8x32xf32>
    %35 = vector.shape_cast %34 : vector<8x8x32xf32> to vector<64x32xf32>
    %36 = arith.truncf %35 : vector<64x32xf32> to vector<64x32xbf16>
    %c2 = arith.constant 2 : index
    %c0_19 = arith.constant 0 : index
    %c0_20 = arith.constant 0 : index
    %37 = vector.load %arg5[%c2, %c0_19, %c0_20] : memref<9x32x32xbf16, #tpu.memory_space<vmem>>, vector<1x32x32xbf16>
    %38 = vector.shape_cast %37 : vector<1x32x32xbf16> to vector<32x32xbf16>
    %cst_21 = arith.constant dense<0.000000e+00> : vector<64x32xf32>
    %39 = tpu.matmul %36, %38, %cst_21 {dimension_numbers = #tpu.dot_dimension_numbers<[1], [0], [0], [1], [0, 0, 1, 1], [], []>} : vector<64x32xbf16>, vector<32x32xbf16>, vector<64x32xf32> -> vector<64x32xf32>
    %40 = arith.addf %33, %39 : vector<64x32xf32>
    %41 = vector.extract_strided_slice %18 {offsets = [1, 0, 0], sizes = [8, 8, 32], strides = [1, 1, 1]} : vector<10x10x32xf32> to vector<8x8x32xf32>
    %42 = vector.shape_cast %41 : vector<8x8x32xf32> to vector<64x32xf32>
    %43 = arith.truncf %42 : vector<64x32xf32> to vector<64x32xbf16>
    %c3 = arith.constant 3 : index
    %c0_22 = arith.constant 0 : index
    %c0_23 = arith.constant 0 : index
    %44 = vector.load %arg5[%c3, %c0_22, %c0_23] : memref<9x32x32xbf16, #tpu.memory_space<vmem>>, vector<1x32x32xbf16>
    %45 = vector.shape_cast %44 : vector<1x32x32xbf16> to vector<32x32xbf16>
    %cst_24 = arith.constant dense<0.000000e+00> : vector<64x32xf32>
    %46 = tpu.matmul %43, %45, %cst_24 {dimension_numbers = #tpu.dot_dimension_numbers<[1], [0], [0], [1], [0, 0, 1, 1], [], []>} : vector<64x32xbf16>, vector<32x32xbf16>, vector<64x32xf32> -> vector<64x32xf32>
    %47 = arith.addf %40, %46 : vector<64x32xf32>
    %48 = vector.extract_strided_slice %18 {offsets = [1, 1, 0], sizes = [8, 8, 32], strides = [1, 1, 1]} : vector<10x10x32xf32> to vector<8x8x32xf32>
    %49 = vector.shape_cast %48 : vector<8x8x32xf32> to vector<64x32xf32>
    %50 = arith.truncf %49 : vector<64x32xf32> to vector<64x32xbf16>
    %c4 = arith.constant 4 : index
    %c0_25 = arith.constant 0 : index
    %c0_26 = arith.constant 0 : index
    %51 = vector.load %arg5[%c4, %c0_25, %c0_26] : memref<9x32x32xbf16, #tpu.memory_space<vmem>>, vector<1x32x32xbf16>
    %52 = vector.shape_cast %51 : vector<1x32x32xbf16> to vector<32x32xbf16>
    %cst_27 = arith.constant dense<0.000000e+00> : vector<64x32xf32>
    %53 = tpu.matmul %50, %52, %cst_27 {dimension_numbers = #tpu.dot_dimension_numbers<[1], [0], [0], [1], [0, 0, 1, 1], [], []>} : vector<64x32xbf16>, vector<32x32xbf16>, vector<64x32xf32> -> vector<64x32xf32>
    %54 = arith.addf %47, %53 : vector<64x32xf32>
    %55 = vector.extract_strided_slice %18 {offsets = [1, 2, 0], sizes = [8, 8, 32], strides = [1, 1, 1]} : vector<10x10x32xf32> to vector<8x8x32xf32>
    %56 = vector.shape_cast %55 : vector<8x8x32xf32> to vector<64x32xf32>
    %57 = arith.truncf %56 : vector<64x32xf32> to vector<64x32xbf16>
    %c5 = arith.constant 5 : index
    %c0_28 = arith.constant 0 : index
    %c0_29 = arith.constant 0 : index
    %58 = vector.load %arg5[%c5, %c0_28, %c0_29] : memref<9x32x32xbf16, #tpu.memory_space<vmem>>, vector<1x32x32xbf16>
    %59 = vector.shape_cast %58 : vector<1x32x32xbf16> to vector<32x32xbf16>
    %cst_30 = arith.constant dense<0.000000e+00> : vector<64x32xf32>
    %60 = tpu.matmul %57, %59, %cst_30 {dimension_numbers = #tpu.dot_dimension_numbers<[1], [0], [0], [1], [0, 0, 1, 1], [], []>} : vector<64x32xbf16>, vector<32x32xbf16>, vector<64x32xf32> -> vector<64x32xf32>
    %61 = arith.addf %54, %60 : vector<64x32xf32>
    %62 = vector.extract_strided_slice %18 {offsets = [2, 0, 0], sizes = [8, 8, 32], strides = [1, 1, 1]} : vector<10x10x32xf32> to vector<8x8x32xf32>
    %63 = vector.shape_cast %62 : vector<8x8x32xf32> to vector<64x32xf32>
    %64 = arith.truncf %63 : vector<64x32xf32> to vector<64x32xbf16>
    %c6 = arith.constant 6 : index
    %c0_31 = arith.constant 0 : index
    %c0_32 = arith.constant 0 : index
    %65 = vector.load %arg5[%c6, %c0_31, %c0_32] : memref<9x32x32xbf16, #tpu.memory_space<vmem>>, vector<1x32x32xbf16>
    %66 = vector.shape_cast %65 : vector<1x32x32xbf16> to vector<32x32xbf16>
    %cst_33 = arith.constant dense<0.000000e+00> : vector<64x32xf32>
    %67 = tpu.matmul %64, %66, %cst_33 {dimension_numbers = #tpu.dot_dimension_numbers<[1], [0], [0], [1], [0, 0, 1, 1], [], []>} : vector<64x32xbf16>, vector<32x32xbf16>, vector<64x32xf32> -> vector<64x32xf32>
    %68 = arith.addf %61, %67 : vector<64x32xf32>
    %69 = vector.extract_strided_slice %18 {offsets = [2, 1, 0], sizes = [8, 8, 32], strides = [1, 1, 1]} : vector<10x10x32xf32> to vector<8x8x32xf32>
    %70 = vector.shape_cast %69 : vector<8x8x32xf32> to vector<64x32xf32>
    %71 = arith.truncf %70 : vector<64x32xf32> to vector<64x32xbf16>
    %c7 = arith.constant 7 : index
    %c0_34 = arith.constant 0 : index
    %c0_35 = arith.constant 0 : index
    %72 = vector.load %arg5[%c7, %c0_34, %c0_35] : memref<9x32x32xbf16, #tpu.memory_space<vmem>>, vector<1x32x32xbf16>
    %73 = vector.shape_cast %72 : vector<1x32x32xbf16> to vector<32x32xbf16>
    %cst_36 = arith.constant dense<0.000000e+00> : vector<64x32xf32>
    %74 = tpu.matmul %71, %73, %cst_36 {dimension_numbers = #tpu.dot_dimension_numbers<[1], [0], [0], [1], [0, 0, 1, 1], [], []>} : vector<64x32xbf16>, vector<32x32xbf16>, vector<64x32xf32> -> vector<64x32xf32>
    %75 = arith.addf %68, %74 : vector<64x32xf32>
    %76 = vector.extract_strided_slice %18 {offsets = [2, 2, 0], sizes = [8, 8, 32], strides = [1, 1, 1]} : vector<10x10x32xf32> to vector<8x8x32xf32>
    %77 = vector.shape_cast %76 : vector<8x8x32xf32> to vector<64x32xf32>
    %78 = arith.truncf %77 : vector<64x32xf32> to vector<64x32xbf16>
    %c8 = arith.constant 8 : index
    %c0_37 = arith.constant 0 : index
    %c0_38 = arith.constant 0 : index
    %79 = vector.load %arg5[%c8, %c0_37, %c0_38] : memref<9x32x32xbf16, #tpu.memory_space<vmem>>, vector<1x32x32xbf16>
    %80 = vector.shape_cast %79 : vector<1x32x32xbf16> to vector<32x32xbf16>
    %cst_39 = arith.constant dense<0.000000e+00> : vector<64x32xf32>
    %81 = tpu.matmul %78, %80, %cst_39 {dimension_numbers = #tpu.dot_dimension_numbers<[1], [0], [0], [1], [0, 0, 1, 1], [], []>} : vector<64x32xbf16>, vector<32x32xbf16>, vector<64x32xf32> -> vector<64x32xf32>
    %82 = arith.addf %75, %81 : vector<64x32xf32>
    %cst_40 = arith.constant dense<0.000000e+00> : vector<32xf32>
    %83 = vector.multi_reduction <add>, %82, %cst_40 [0] : vector<64x32xf32> to vector<32xf32>
    %84 = vector.shape_cast %83 : vector<32xf32> to vector<1x32xf32>
    %cst_41 = arith.constant 6.400000e+01 : f32
    %85 = vector.broadcast %cst_41 : f32 to vector<1x32xf32>
    %86 = arith.divf %84, %85 : vector<1x32xf32>
    %cst_42 = arith.constant dense<0xFF800000> : vector<32xf32>
    %87 = vector.multi_reduction <maximumf>, %82, %cst_42 [0] : vector<64x32xf32> to vector<32xf32>
    %88 = vector.shape_cast %87 : vector<32xf32> to vector<1x32xf32>
    %c0_43 = arith.constant 0 : index
    %c0_44 = arith.constant 0 : index
    %89 = vector.load %arg6[%c0_43, %c0_44] : memref<32x2xf32, #tpu.memory_space<vmem>>, vector<32x2xf32>
    %cst_45 = arith.constant dense<0.000000e+00> : vector<1x2xf32>
    %90 = tpu.matmul %86, %89, %cst_45 {dimension_numbers = #tpu.dot_dimension_numbers<[1], [0], [0], [1], [0, 0, 1, 1], [], []>} : vector<1x32xf32>, vector<32x2xf32>, vector<1x2xf32> -> vector<1x2xf32>
    %c0_46 = arith.constant 0 : index
    %c0_47 = arith.constant 0 : index
    %91 = vector.load %arg7[%c0_46, %c0_47] : memref<1x2xf32, #tpu.memory_space<vmem>>, vector<1x2xf32>
    %92 = arith.addf %90, %91 : vector<1x2xf32>
    %cst_48 = arith.constant 0.000000e+00 : f32
    %93 = vector.broadcast %cst_48 : f32 to vector<1x2xf32>
    %94 = arith.maximumf %92, %93 : vector<1x2xf32>
    %c0_49 = arith.constant 0 : index
    %c0_50 = arith.constant 0 : index
    %95 = vector.load %arg8[%c0_49, %c0_50] : memref<2x32xf32, #tpu.memory_space<vmem>>, vector<2x32xf32>
    %cst_51 = arith.constant dense<0.000000e+00> : vector<1x32xf32>
    %96 = tpu.matmul %94, %95, %cst_51 {dimension_numbers = #tpu.dot_dimension_numbers<[1], [0], [0], [1], [0, 0, 1, 1], [], []>} : vector<1x2xf32>, vector<2x32xf32>, vector<1x32xf32> -> vector<1x32xf32>
    %c0_52 = arith.constant 0 : index
    %c0_53 = arith.constant 0 : index
    %97 = vector.load %arg9[%c0_52, %c0_53] : memref<1x32xf32, #tpu.memory_space<vmem>>, vector<1x32xf32>
    %98 = arith.addf %96, %97 : vector<1x32xf32>
    %c0_54 = arith.constant 0 : index
    %c0_55 = arith.constant 0 : index
    %99 = vector.load %arg6[%c0_54, %c0_55] : memref<32x2xf32, #tpu.memory_space<vmem>>, vector<32x2xf32>
    %cst_56 = arith.constant dense<0.000000e+00> : vector<1x2xf32>
    %100 = tpu.matmul %88, %99, %cst_56 {dimension_numbers = #tpu.dot_dimension_numbers<[1], [0], [0], [1], [0, 0, 1, 1], [], []>} : vector<1x32xf32>, vector<32x2xf32>, vector<1x2xf32> -> vector<1x2xf32>
    %c0_57 = arith.constant 0 : index
    %c0_58 = arith.constant 0 : index
    %101 = vector.load %arg7[%c0_57, %c0_58] : memref<1x2xf32, #tpu.memory_space<vmem>>, vector<1x2xf32>
    %102 = arith.addf %100, %101 : vector<1x2xf32>
    %cst_59 = arith.constant 0.000000e+00 : f32
    %103 = vector.broadcast %cst_59 : f32 to vector<1x2xf32>
    %104 = arith.maximumf %102, %103 : vector<1x2xf32>
    %c0_60 = arith.constant 0 : index
    %c0_61 = arith.constant 0 : index
    %105 = vector.load %arg8[%c0_60, %c0_61] : memref<2x32xf32, #tpu.memory_space<vmem>>, vector<2x32xf32>
    %cst_62 = arith.constant dense<0.000000e+00> : vector<1x32xf32>
    %106 = tpu.matmul %104, %105, %cst_62 {dimension_numbers = #tpu.dot_dimension_numbers<[1], [0], [0], [1], [0, 0, 1, 1], [], []>} : vector<1x2xf32>, vector<2x32xf32>, vector<1x32xf32> -> vector<1x32xf32>
    %c0_63 = arith.constant 0 : index
    %c0_64 = arith.constant 0 : index
    %107 = vector.load %arg9[%c0_63, %c0_64] : memref<1x32xf32, #tpu.memory_space<vmem>>, vector<1x32xf32>
    %108 = arith.addf %106, %107 : vector<1x32xf32>
    %109 = arith.addf %98, %108 : vector<1x32xf32>
    %c0_65 = arith.constant 0 : index
    %c0_66 = arith.constant 0 : index
    %c0_67 = arith.constant 0 : index
    %110 = vector.load %arg11[%c0_65, %c0_66, %c0_67] : memref<1x1x16xf32, #tpu.memory_space<vmem>>, vector<1x1x16xf32>
    %111 = vector.shape_cast %110 : vector<1x1x16xf32> to vector<1x16xf32>
    %c0_68 = arith.constant 0 : index
    %c0_69 = arith.constant 0 : index
    %112 = vector.load %arg10[%c0_68, %c0_69] : memref<16x32xf32, #tpu.memory_space<vmem>>, vector<16x32xf32>
    %cst_70 = arith.constant dense<0.000000e+00> : vector<1x32xf32>
    %113 = tpu.matmul %111, %112, %cst_70 {dimension_numbers = #tpu.dot_dimension_numbers<[1], [0], [0], [1], [0, 0, 1, 1], [], []>} : vector<1x16xf32>, vector<16x32xf32>, vector<1x32xf32> -> vector<1x32xf32>
    %114 = arith.addf %109, %113 : vector<1x32xf32>
    %c0_71 = arith.constant 0 : index
    %c0_72 = arith.constant 0 : index
    %c0_73 = arith.constant 0 : index
    %115 = vector.load %arg15[%c0_71, %c0_72, %c0_73] : memref<1x1x32xf32, #tpu.memory_space<vmem>>, vector<1x1x32xf32>
    %116 = vector.shape_cast %115 : vector<1x1x32xf32> to vector<1x32xf32>
    %117 = vector.shape_cast %114 : vector<1x32xf32> to vector<1x1x32xf32>
    tpu.vector_store %arg15[%c0_71, %c0_72, %c0_73], %117 {strides = array<i32>} : memref<1x1x32xf32, #tpu.memory_space<vmem>>, vector<1x1x32xf32>,
    %cst_74 = arith.constant 0.000000e+00 : f32
    %118 = vector.broadcast %cst_74 : f32 to vector<1x32xf32>
    %119 = arith.subf %118, %114 : vector<1x32xf32>
    %120 = math.exp %119 : vector<1x32xf32>
    %cst_75 = arith.constant 1.000000e+00 : f32
    %121 = vector.broadcast %cst_75 : f32 to vector<1x32xf32>
    %122 = arith.addf %121, %120 : vector<1x32xf32>
    %123 = tpu.reciprocal %122 {approx = true} : vector<1x32xf32> -> vector<1x32xf32>
    %124 = vector.broadcast %123 : vector<1x32xf32> to vector<64x32xf32>
    %125 = arith.mulf %82, %124 : vector<64x32xf32>
    %cst_76 = arith.constant dense<0xFF800000> : vector<64xf32>
    %126 = vector.multi_reduction <maximumf>, %125, %cst_76 [1] : vector<64x32xf32> to vector<64xf32>
    %127 = vector.shape_cast %126 : vector<64xf32> to vector<64x1xf32>
    %cst_77 = arith.constant dense<0.000000e+00> : vector<64xf32>
    %128 = vector.multi_reduction <add>, %125, %cst_77 [1] : vector<64x32xf32> to vector<64xf32>
    %129 = vector.shape_cast %128 : vector<64xf32> to vector<64x1xf32>
    %cst_78 = arith.constant 3.200000e+01 : f32
    %130 = vector.broadcast %cst_78 : f32 to vector<64x1xf32>
    %131 = arith.divf %129, %130 : vector<64x1xf32>
    %132 = tpu.concatenate %127, %131 in 0 : vector<64x1xf32>, vector<64x1xf32> -> vector<128x1xf32>
    %c0_79 = arith.constant 0 : index
    %c0_80 = arith.constant 0 : index
    %133 = vector.load %arg12[%c0_79, %c0_80] : memref<64x128xf32, #tpu.memory_space<vmem>>, vector<64x128xf32>
    %cst_81 = arith.constant dense<0.000000e+00> : vector<64x1xf32>
    %134 = tpu.matmul %133, %132, %cst_81 {dimension_numbers = #tpu.dot_dimension_numbers<[1], [0], [0], [1], [0, 0, 1, 1], [], []>} : vector<64x128xf32>, vector<128x1xf32>, vector<64x1xf32> -> vector<64x1xf32>
    %c0_82 = arith.constant 0 : index
    %c0_83 = arith.constant 0 : index
    %c0_84 = arith.constant 0 : index
    %135 = vector.load %arg13[%c0_82, %c0_83, %c0_84] : memref<1x64x1xf32, #tpu.memory_space<vmem>>, vector<1x64x1xf32>
    %136 = vector.shape_cast %135 : vector<1x64x1xf32> to vector<64x1xf32>
    %137 = arith.addf %134, %136 : vector<64x1xf32>
    %c0_85 = arith.constant 0 : index
    %c0_86 = arith.constant 0 : index
    %c0_87 = arith.constant 0 : index
    %138 = vector.load %arg16[%c0_85, %c0_86, %c0_87] : memref<1x64x1xf32, #tpu.memory_space<vmem>>, vector<1x64x1xf32>
    %139 = vector.shape_cast %138 : vector<1x64x1xf32> to vector<64x1xf32>
    %140 = vector.shape_cast %137 : vector<64x1xf32> to vector<1x64x1xf32>
    tpu.vector_store %arg16[%c0_85, %c0_86, %c0_87], %140 {strides = array<i32>} : memref<1x64x1xf32, #tpu.memory_space<vmem>>, vector<1x64x1xf32>,
    %cst_88 = arith.constant 0.000000e+00 : f32
    %141 = vector.broadcast %cst_88 : f32 to vector<64x1xf32>
    %142 = arith.subf %141, %137 : vector<64x1xf32>
    %143 = math.exp %142 : vector<64x1xf32>
    %cst_89 = arith.constant 1.000000e+00 : f32
    %144 = vector.broadcast %cst_89 : f32 to vector<64x1xf32>
    %145 = arith.addf %144, %143 : vector<64x1xf32>
    %146 = tpu.reciprocal %145 {approx = true} : vector<64x1xf32> -> vector<64x1xf32>
    %147 = vector.broadcast %146 : vector<64x1xf32> to vector<64x32xf32>
    %148 = arith.mulf %125, %147 : vector<64x32xf32>
    %149 = arith.addf %148, %5 : vector<64x32xf32>
    %c0_90 = arith.constant 0 : index
    %c0_91 = arith.constant 0 : index
    %c0_92 = arith.constant 0 : index
    %150 = vector.load %arg14[%c0_90, %c0_91, %c0_92] : memref<1x64x32xf32, #tpu.memory_space<vmem>>, vector<1x64x32xf32>
    %151 = vector.shape_cast %150 : vector<1x64x32xf32> to vector<64x32xf32>
    %152 = vector.shape_cast %149 : vector<64x32xf32> to vector<1x64x32xf32>
    tpu.vector_store %arg14[%c0_90, %c0_91, %c0_92], %152 {strides = array<i32>} : memref<1x64x32xf32, #tpu.memory_space<vmem>>, vector<1x64x32xf32>,
    return
  }
  func.func @transform_0(%arg0: i32) -> (i32, i32, i32) {
    %c0_i32 = arith.constant 0 : i32
    %c0_i32_0 = arith.constant 0 : i32
    %c0_i32_1 = arith.constant 0 : i32
    return %arg0, %c0_i32, %c0_i32_0 : i32, i32, i32
  }
  func.func @transform_1(%arg0: i32) -> (i32, i32) {
    %c0_i32 = arith.constant 0 : i32
    %c0_i32_0 = arith.constant 0 : i32
    %c0_i32_1 = arith.constant 0 : i32
    return %c0_i32, %c0_i32_0 : i32, i32
  }
  func.func @transform_2(%arg0: i32) -> (i32, i32) {
    %c0_i32 = arith.constant 0 : i32
    %c0_i32_0 = arith.constant 0 : i32
    %c0_i32_1 = arith.constant 0 : i32
    return %c0_i32, %c0_i32_0 : i32, i32
  }
  func.func @transform_3(%arg0: i32) -> (i32, i32) {
    %c0_i32 = arith.constant 0 : i32
    %c0_i32_0 = arith.constant 0 : i32
    %c0_i32_1 = arith.constant 0 : i32
    return %c0_i32, %c0_i32_0 : i32, i32
  }
  func.func @transform_4(%arg0: i32) -> (i32, i32, i32) {
    %c0_i32 = arith.constant 0 : i32
    %c0_i32_0 = arith.constant 0 : i32
    %c0_i32_1 = arith.constant 0 : i32
    %c0_i32_2 = arith.constant 0 : i32
    return %c0_i32, %c0_i32_0, %c0_i32_1 : i32, i32, i32
  }
  func.func @transform_5(%arg0: i32) -> (i32, i32) {
    %c0_i32 = arith.constant 0 : i32
    %c0_i32_0 = arith.constant 0 : i32
    %c0_i32_1 = arith.constant 0 : i32
    return %c0_i32, %c0_i32_0 : i32, i32
  }
  func.func @transform_6(%arg0: i32) -> (i32, i32) {
    %c0_i32 = arith.constant 0 : i32
    %c0_i32_0 = arith.constant 0 : i32
    %c0_i32_1 = arith.constant 0 : i32
    return %c0_i32, %c0_i32_0 : i32, i32
  }
  func.func @transform_7(%arg0: i32) -> (i32, i32) {
    %c0_i32 = arith.constant 0 : i32
    %c0_i32_0 = arith.constant 0 : i32
    %c0_i32_1 = arith.constant 0 : i32
    return %c0_i32, %c0_i32_0 : i32, i32
  }
  func.func @transform_8(%arg0: i32) -> (i32, i32) {
    %c0_i32 = arith.constant 0 : i32
    %c0_i32_0 = arith.constant 0 : i32
    %c0_i32_1 = arith.constant 0 : i32
    return %c0_i32, %c0_i32_0 : i32, i32
  }
  func.func @transform_9(%arg0: i32) -> (i32, i32) {
    %c0_i32 = arith.constant 0 : i32
    %c0_i32_0 = arith.constant 0 : i32
    %c0_i32_1 = arith.constant 0 : i32
    return %c0_i32, %c0_i32_0 : i32, i32
  }
  func.func @transform_10(%arg0: i32) -> (i32, i32, i32) {
    %c0_i32 = arith.constant 0 : i32
    %c0_i32_0 = arith.constant 0 : i32
    %c0_i32_1 = arith.constant 0 : i32
    return %arg0, %c0_i32, %c0_i32_0 : i32, i32, i32
  }
  func.func @transform_11(%arg0: i32) -> (i32, i32) {
    %c0_i32 = arith.constant 0 : i32
    %c0_i32_0 = arith.constant 0 : i32
    %c0_i32_1 = arith.constant 0 : i32
    return %c0_i32, %c0_i32_0 : i32, i32
  }
  func.func @transform_12(%arg0: i32) -> (i32, i32, i32) {
    %c0_i32 = arith.constant 0 : i32
    %c0_i32_0 = arith.constant 0 : i32
    %c0_i32_1 = arith.constant 0 : i32
    return %arg0, %c0_i32, %c0_i32_0 : i32, i32, i32
  }
  func.func @transform_13(%arg0: i32) -> (i32, i32, i32) {
    %c0_i32 = arith.constant 0 : i32
    %c0_i32_0 = arith.constant 0 : i32
    %c0_i32_1 = arith.constant 0 : i32
    return %arg0, %c0_i32, %c0_i32_0 : i32, i32, i32
  }
  func.func @transform_14(%arg0: i32) -> (i32, i32, i32) {
    %c0_i32 = arith.constant 0 : i32
    %c0_i32_0 = arith.constant 0 : i32
    %c0_i32_1 = arith.constant 0 : i32
    return %arg0, %c0_i32, %c0_i32_0 : i32, i32, i32
  }
  func.func @transform_15(%arg0: i32) -> (i32, i32, i32) {
    %c0_i32 = arith.constant 0 : i32
    %c0_i32_0 = arith.constant 0 : i32
    %c0_i32_1 = arith.constant 0 : i32
    return %arg0, %c0_i32, %c0_i32_0 : i32, i32, i32
  }
}

</mosaic_0001>

<bundles_post_ra>
// kernel: tile.13
= control target key start
LH: loop header
LB: loop body
LE: loop exit
PB: predicated region body
PF: predicated region fallthrough
CT: control target
= control target key end

     0   :  { %s22_s0 = inlined_call_operand.vmem [shape: f32[16], index: 0, kind: input, shape index: {}]   ;;  %s23_s1 = inlined_call_operand.vmem [shape: f32[8,16], index: 1, kind: output, shape index: {}]  }
   0x1   :  { %v4_v0 = vld [vmem:[%s22_s0] ss:$0 sm:$0xff] }
   0x2   :  { %5 = vst [vmem:[%s23_s1] sm:$0xff] %v4_v0 }

// kernel: tile.14
= control target key start
LH: loop header
LB: loop body
LE: loop exit
PB: predicated region body
PF: predicated region fallthrough
CT: control target
= control target key end

     0   :  { %s67_s10 = smov 112   ;;  %s68_s11 = smov 80   ;;  %vm3_vm0 = vcmask 130048   ;;  %vm9_vm1 = vcmask 1048448   ;;  %vm15_vm2 = vcmask 917248   ;;  %vm21_vm3 = vcmask 786048   ;;  %s111_s0 = inlined_call_operand.vmem [shape: f32[8,16], index: 0, kind: input, shape index: {}]   ;;  %s112_s1 = inlined_call_operand.vmem [shape: f32[1,128], index: 1, kind: output, shape index: {}]  }
   0x1   :  { %v53_v0 = vld [vmem:[%s111_s0 + $0x7] sm:$0x1]   ;;  %v55_v1 = vld [vmem:[%s111_s0 + $0x5] sm:$0x1]   ;;  %v54_v2 = vld [vmem:[%s111_s0 + $0x6] sm:$0x1]  }
   0x2   :  { %7 = vrot.lane.b32.xlu0 %v53_v0, %s67_s10  ;;  %19 = vrot.lane.b32.xlu1 %v55_v1, %s68_s11  ;;  %v56_v3 = vld [vmem:[%s111_s0 + $0x4] sm:$0x1]   ;;  %v2_v4 = vld [vmem:[%s111_s0] sm:$0x1]   ;;  %s69_s18 = smov 96   ;;  %s70_s19 = smov 64  }
   0x3   :  { %4 = vst.msk [vmem:[#allocation0] sm:$0x1] %vm3_vm0, %v2_v4   ;;  %v57_v5 = vld [vmem:[%s111_s0 + $0x3] sm:$0x1]   ;;  %v58_v6 = vld [vmem:[%s111_s0 + $0x2] sm:$0x1]  }
   0x4   :  { %s71_s24 = smov 48   ;;  %s72_s25 = smov 32   ;;  %v59_v7 = vld [vmem:[%s111_s0 + $0x1] sm:$0x1]   ;;  %vm27_vm4 = vcmask 654848   ;;  %vm33_vm5 = vcmask 523648  }
   0x5   :  { %s73_s0 = smov 16   ;;  %vm39_vm6 = vcmask 392448   ;;  %vm45_vm7 = vcmask 261248  }
   0x6   :  { %13 = vrot.lane.b32.xlu0 %v54_v2, %s69_s18  ;;  %25 = vrot.lane.b32.xlu1 %v56_v3, %s70_s19 }
   0xa   :  { %31 = vrot.lane.b32.xlu0 %v57_v5, %s71_s24  ;;  %37 = vrot.lane.b32.xlu1 %v58_v6, %s72_s25 }
   0xe   :  { %43 = vrot.lane.b32.xlu0 %v59_v7, %s73_s0 }
  0x74   :  { %v8_v8 = vpop.permute.xlu0 %7   ;;  %v20_v9 = vpop.permute.xlu1 %19  }
  0x75   :  { %10 = vst.msk [vmem:[#allocation0] sm:$0x1] %vm9_vm1, %v8_v8  }
  0x78   :  { %v14_v10 = vpop.permute.xlu0 %13   ;;  %v26_v11 = vpop.permute.xlu1 %25  }
  0x79   :  { %16 = vst.msk [vmem:[#allocation0] sm:$0x1] %vm15_vm2, %v14_v10  }
  0x7a   :  { %22 = vst.msk [vmem:[#allocation0] sm:$0x1] %vm21_vm3, %v20_v9  }
  0x7b   :  { %28 = vst.msk [vmem:[#allocation0] sm:$0x1] %vm27_vm4, %v26_v11  }
  0x7c   :  { %v32_v12 = vpop.permute.xlu0 %31   ;;  %v38_v13 = vpop.permute.xlu1 %37  }
  0x7d   :  { %34 = vst.msk [vmem:[#allocation0] sm:$0x1] %vm33_vm5, %v32_v12  }
  0x7e   :  { %40 = vst.msk [vmem:[#allocation0] sm:$0x1] %vm39_vm6, %v38_v13  }
  0x80   :  { %v44_v14 = vpop.permute.xlu0 %43  }
  0x81   :  { %46 = vst.msk [vmem:[#allocation0] sm:$0x1] %vm45_vm7, %v44_v14  }
  0x88   :  { %v50_v15 = vld [vmem:[#allocation0] sm:$0x1] }
  0x89   :  { %52 = vst [vmem:[%s112_s1] sm:$0x1] %v50_v15 }

// kernel: preact_block_forward.2
= control target key start
LH: loop header
LB: loop body
LE: loop exit
PB: predicated region body
PF: predicated region fallthrough
CT: control target
= control target key end

     0   :  { %s313_s12 = smov 0   ;;  %s336_s0 = inlined_call_operand.vmem [shape: f32[64,128], index: 0, kind: input, shape index: {}]   ;;  %s337_s1 = inlined_call_operand.vmem [shape: f32[1,128], index: 1, kind: input, shape index: {}]   ;;  %s338_s2 = inlined_call_operand.vmem [shape: f32[1,128], index: 2, kind: input, shape index: {}]   ;;  %s339_s3 = inlined_call_operand.vmem [shape: f32[64,128], index: 3, kind: output, shape index: {}]  }
   0x1 LB: > { %s264_s13 = sadd.s32 4294967295, %s291_s12   ;;  %p268_p0 = scmp.ge.s32.totalorder %s291_s12, 1  ;;  %s291_s12 = sphi %s313_s12, %s13_s12  }
   0x2   : > { %p138_p1 = scmp.lt.s32.totalorder %s291_s12, 3 }
   0x4   : > { %p139_p2 = pnand %p268_p0, %p138_p1 }
   0x5   : > { %s269_s14 = sshll.u32 (!%p139_p2), %s264_s13, 2  ;;  %v273_v0 = vld [vmem:[%s337_s1] ss:$0 sm:$0xff] (!%p139_p2) }
   0x6   : > { %142 = sbr.rel (%p139_p2) target bundleno = 25 (0x19), region = 32  ;;  %p163_p3 = scmp.lt.s32.totalorder (!%p139_p2), %s269_s14, 7  ;;  %v274_v1 = vld [vmem:[%s338_s2] ss:$0 sm:$0xff] (!%p139_p2) }
   0xd   : > { %s341_s14 = smov (!%p163_p3, %s269_s14), 7 }
   0xe   : > { %s270_s15 = sshll.u32 %s341_s14, 3 }
   0xf   : > { %s166_s20 = scalar_lea.vmem %s336_s0, %s270_s15  ;;  %s172_s25 = scalar_lea.vmem %s339_s3, %s270_s15 }
  0x10   : > { %v174_v2 = vld [vmem:[%s166_s20] sm:$0xff]  ;;  %v175_v3 = vld [vmem:[%s166_s20 + $0x8] sm:$0xff]  ;;  %v176_v4 = vld [vmem:[%s166_s20 + $0x10] sm:$0xff] }
  0x11   : > { %v185_v5 = vmul.f32 %v273_v0, %v174_v2  ;;  %v186_v6 = vmul.f32 %v273_v0, %v175_v3  ;;  %v187_v7 = vmul.f32 %v273_v0, %v176_v4  ;;  %v177_v8 = vld [vmem:[%s166_s20 + $0x18] sm:$0xff] }
  0x12   : > { %v188_v9 = vmul.f32 %v273_v0, %v177_v8 }
  0x13   : > { %v196_v10 = vadd.f32 %v274_v1, %v185_v5  ;;  %v197_v11 = vadd.f32 %v274_v1, %v186_v6  ;;  %v198_v12 = vadd.f32 %v274_v1, %v187_v7 }
  0x14   : > { %v199_v13 = vadd.f32 %v274_v1, %v188_v9 }
  0x15   : > { %v200_v14 = vmax.f32 %v196_v10, 0.0  ;;  %v201_v15 = vmax.f32 %v197_v11, 0.0  ;;  %v202_v16 = vmax.f32 %v198_v12, 0.0 }
  0x16   : > { %v203_v17 = vmax.f32 %v199_v13, 0.0 }
  0x17   : > { %204 = vst [vmem:[%s172_s25] sm:$0xff] %v200_v14  ;;  %205 = vst [vmem:[%s172_s25 + $0x8] sm:$0xff] %v201_v15 }
  0x18   : > { %206 = vst [vmem:[%s172_s25 + $0x10] sm:$0xff] %v202_v16  ;;  %207 = vst [vmem:[%s172_s25 + $0x18] sm:$0xff] %v203_v17 }
  0x19 PF: > { %s13_s12 = sadd.s32 1, %s291_s12  }
  0x1a   : > { %p10_p4 = scmp.ge.s32.totalorder %s13_s12, 4  }
  0x1c   :  { %12 = sbr.rel (!%p10_p4) target bundleno = 1 (0x1), region = 62 }

// kernel: preact_block_forward.3
= control target key start
LH: loop header
LB: loop body
LE: loop exit
PB: predicated region body
PF: predicated region fallthrough
CT: control target
= control target key end

     0   :  { %s4430_s0 = inlined_call_operand.vmem [shape: bf16[2,64,144], index: 0, kind: input, shape index: {}]   ;;  %s4431_s1 = inlined_call_operand.vmem [shape: bf16[144,64], index: 1, kind: input, shape index: {}]   ;;  %s4432_s2 = inlined_call_operand.vmem [shape: f32[1,32], index: 2, kind: input, shape index: {}]   ;;  %s4433_s3 = inlined_call_operand.vmem [shape: f32[1,32], index: 3, kind: input, shape index: {}]   ;;  %s4434_s4 = inlined_call_operand.vmem [shape: bf16[9,32,32], index: 4, kind: input, shape index: {}]   ;;  %s4435_s5 = inlined_call_operand.vmem [shape: f32[32,2], index: 5, kind: input, shape index: {}]   ;;  %s4436_s6 = inlined_call_operand.vmem [shape: f32[1,2], index: 6, kind: input, shape index: {}]   ;;  %s4437_s7 = inlined_call_operand.vmem [shape: f32[2,32], index: 7, kind: input, shape index: {}]   ;;  %s4438_s8 = inlined_call_operand.vmem [shape: f32[1,32], index: 8, kind: input, shape index: {}]   ;;  %s4439_s9 = inlined_call_operand.vmem [shape: f32[16,32], index: 9, kind: input, shape index: {}]   ;;  %s4440_s10 = inlined_call_operand.vmem [shape: f32[2,1,16], index: 10, kind: input, shape index: {}]   ;;  %s4441_s11 = inlined_call_operand.vmem [shape: f32[64,128], index: 11, kind: input, shape index: {}]   ;;  %s4442_s12 = inlined_call_operand.vmem [shape: f32[2,64,1], index: 12, kind: input, shape index: {}]   ;;  %s4443_s13 = inlined_call_operand.hbm [shape: f32[2,64,32], index: 13, kind: output, shape index: {0}]   ;;  %s4444_s14 = inlined_call_operand.hbm [shape: f32[2,1,32], index: 14, kind: output, shape index: {1}]   ;;  %s4445_s15 = inlined_call_operand.vmem [shape: f32[2,64,1], index: 15, kind: output, shape index: {2}]  }
   0x1   :  { %4452 = sst [smem:[#allocation11_spill]] %s4430_s0 }
   0x2   :  { %4453 = sst [smem:[#allocation12_spill]] %s4431_s1 }
   0x3   :  { %4454 = sst [smem:[#allocation13_spill]] %s4432_s2 }
   0x4   :  { %4455 = sst [smem:[#allocation14_spill]] %s4433_s3 }
   0x5   :  { %21 = vsyncpa [#allocation3], 0 }
   0x6   :  { %23 = vsyncpa [#allocation3 + $0x1], 0 }
   0x7   :  { %24 = vsyncpa [#allocation5], 0 }
   0x8   :  { %26 = vsyncpa [#allocation5 + $0x1], 0  ;;  %s3616_s18 = smov 0   ;;  %s3618_s19 = smov 0  }
   0x9   :  { %s3620_s20 = smov 0   ;;  %s3622_s21 = smov 0  }
   0xa LB: > { %4456 = sst [smem:[#allocation8_spill]] %s3521_s20  ;;  %s3637_s22 = sadd.s32 4294967295, %s3525_s21   ;;  %s3525_s21 = sphi %s3622_s21, %s4467_s21   ;;  %s3521_s20 = sphi %s3620_s20, %s4469_s20   ;;  %s3517_s19 = sphi %s3618_s19, %s4471_s19   ;;  %s3513_s18 = sphi %s3616_s18, %s4470_s18  }
   0xb   : > { %s2759_s23 = sadd.s32 4294967294, %s3525_s21   ;;  %s3641_s24 = sadd.s32 1, %s3525_s21  }
   0xc   : > { %4457 = sst [smem:[#allocation9_spill]] %s3641_s24  ;;  %s327_s25 = sadd.s32 1, %s3521_s20 }
   0xd   : > { %s324_s26 = ssub.s32 %s3525_s21, %s3641_s24  ;;  %p337_p0 = scmp.ne.s32.totalorder %s3521_s20, %s3517_s19 }
   0xe   : > { %p325_p1 = scmp.eq.s32.totalorder %s324_s26, 0  ;;  %p338_p2 = scmp.eq.s32.totalorder %s3637_s22, 1 }
   0xf   : > { %p343_p3 = scmp.ne.s32.totalorder %s3517_s19, %s3513_s18  ;;  %p344_p4 = scmp.eq.s32.totalorder %s2759_s23, 1 }
  0x10   : > { %s3652_s27 = scalar_select %p325_p1, %s3521_s20, %s327_s25  }
  0x11   : > { %p3654_p5 = por %p338_p2, %p337_p0  ;;  %p3658_p6 = por %p344_p4, %p343_p3 }
  0x12   : > { %4458 = sst [smem:[#allocation10_spill]] %s3652_s27  ;;  %p2762_p7 = scmp.ge.s32.totalorder %s3525_s21, 1 }
  0x13   : > { %p466_p8 = scmp.lt.s32.totalorder %s3525_s21, 3 }
  0x15   : > { %p467_p9 = pnand %p2762_p7, %p466_p8 }
  0x16   : > { %s4461_s1 = sld [smem:[#allocation12_spill]] (!%p467_p9)  ;;  %v3527_v1 = vmov (!%p467_p9), 0   ;;  %p531_p10 = scmp.lt.s32.totalorder (!%p467_p9), %s3637_s22, 1  ;;  %vm666_vm0 = vcmask (!%p467_p9), 130048   ;;  %v3377_v18 = vld [vmem:[%s4434_s4 + $0x10] sm:$0xff] (!%p467_p9)   ;;  %v3378_v19 = vld [vmem:[%s4434_s4 + $0x18] sm:$0xff] (!%p467_p9)  }
  0x17   : > { %470 = sbr.rel (%p467_p9) target bundleno = 1979 (0x7bb), region = 72  ;;  %679 = vmatprep.subr.bf16.mxu0 (!%p467_p9), %v3527_v1  ;;  %3354 = vset.pattern.permute.xlu1 (!%p467_p9), %v3527_v1  ;;  %s4462_s0 = sld [smem:[#allocation11_spill]] (!%p467_p9)  ;;  %v3725_v20 = vld [vmem:[%s4434_s4] sm:$0xff] (!%p467_p9)   ;;  %vm806_vm1 = vcmask (!%p467_p9), 1040384   ;;  %vm846_vm2 = vcmask (!%p467_p9), 1046528   ;;  %vm1066_vm3 = vcmask (!%p467_p9), 1045504  }
  0x18   : > { %3355 = vset.pattern.permute.xlu0 (!%p467_p9), %v3527_v1  ;;  %3229 = vmatprep.subr.bf16.mxu1 (!%p467_p9), %v3377_v18  ;;  %s4463_s2 = sld [smem:[#allocation13_spill]] (!%p467_p9)  ;;  %s4464_s3 = sld [smem:[#allocation14_spill]] (!%p467_p9)  ;;  %v3528_v35 = vmov (!%p467_p9), 0.0   ;;  %vm899_vm4 = vcmask (!%p467_p9), 261120   ;;  %vm3530_vm5 = vmmov (!%p467_p9), 0   ;;  %vm1943_vm6 = vcmask (!%p467_p9), 1041408  }
  0x19   : > { %3231 = vmatpush3.bf16.msra.mxu1 (!%p467_p9), %v3377_v18  ;;  %v3751_v36 = vrot.slane (!%p467_p9), %v3528_v35, 1  ;;  %vm1939_vm7 = vcmask (!%p467_p9), 15360   ;;  %s4190_s30 = sand.u32 (!%p467_p9), 1, %s3517_s19   ;;  %vm2242_vm8 = vcmask (!%p467_p9), 253952   ;;  %vm2439_vm9 = vcmask (!%p467_p9), 7168  }
  0x1a   : > { %3230 = vmatprep.subr.bf16.mxu1 (!%p467_p9), %v3378_v19  ;;  %s4449_s16 = scalar_lea.vmem (!%p467_p9), [#allocation4], %s4190_s30  ;;  %s4466_s20 = scalar_lea.vmem (!%p467_p9), [#allocation4], %s4190_s30 }
  0x1c   : > { %v3356_v0 = vld [vmem:[%s4461_s1] sm:$0xff] (!%p467_p9)   ;;  %v3357_v2 = vld [vmem:[%s4461_s1 + $0x8] sm:$0xff] (!%p467_p9)   ;;  %v3358_v3 = vld [vmem:[%s4461_s1 + $0x10] sm:$0xff] (!%p467_p9)  }
  0x1d   : > { %680 = vmatpush1.bf16.msra.mxu0 (!%p467_p9), %v3356_v0  ;;  %v3359_v4 = vld [vmem:[%s4461_s1 + $0x18] sm:$0xff] (!%p467_p9)   ;;  %v3360_v6 = vld [vmem:[%s4461_s1 + $0x20] sm:$0xff] (!%p467_p9)   ;;  %v3361_v7 = vld [vmem:[%s4461_s1 + $0x28] sm:$0xff] (!%p467_p9)   ;;  %3232 = vmatpush3.bf16.msra.mxu1 (!%p467_p9), %v3378_v19 }
  0x1e   : > { %681 = vmatprep.subr.bf16.mxu0 %v3527_v1  ;;  %s3672_s25 = scalar_select %p531_p10, %s3637_s22, 1  ;;  %v3362_v8 = vld [vmem:[%s4461_s1 + $0x30] sm:$0xff]   ;;  %v3363_v9 = vld [vmem:[%s4461_s1 + $0x38] sm:$0xff]   ;;  %v3364_v10 = vld [vmem:[%s4461_s1 + $0x40] sm:$0xff]   ;;  %3003 = vmatprep.subr.bf16.mxu1 %v3725_v20 }
  0x1f   : > { %v3731_v21 = vld [vmem:[%s4463_s2] ss:$0 sm:$0xff]  ;;  %s4465_s2 = smov 96  }
  0x20   : > { %s3675_s26 = sshll.u32 %s3672_s25, 6  ;;  %v3738_v23 = vld [vmem:[%s4464_s3] ss:$0 sm:$0xff] }
  0x21   : > { %682 = vmatpush1.bf16.msra.mxu0 %v3357_v2  ;;  %s3684_s24 = scalar_lea.vmem %s4462_s0, %s3675_s26  ;;  %s4291_s27 = scalar_lea.vmem %s4445_s15, %s3675_s26 }
  0x22   : > { %683 = vmatprep.subr.bf16.mxu0 %v3527_v1  ;;  %v3367_v5 = vld [vmem:[%s3684_s24 + $0x4] ss:$8 sps:$4 sm:$0xff]   ;;  %v3365_v11 = vld [vmem:[%s3684_s24] ss:$8 sps:$4 sm:$0xff]   ;;  %v3368_v12 = vld [vmem:[%s3684_s24 + $0x14] ss:$8 sps:$4 sm:$0xff]  }
  0x23   : > { %2787 = vmatprep.mubr.msk.bf16.mxu0 %vm666_vm0, %v3367_v5  ;;  %v3370_v13 = vld [vmem:[%s3684_s24 + $0x10] ss:$8 sps:$4 sm:$0xff]   ;;  %v3371_v14 = vld [vmem:[%s3684_s24 + $0x24] ss:$8 sps:$4 sm:$0xff]   ;;  %v3373_v15 = vld [vmem:[%s3684_s24 + $0x20] ss:$8 sps:$4 sm:$0xff]  }
  0x24   : > { %v3374_v16 = vld [vmem:[%s3684_s24 + $0x34] ss:$8 sps:$4 sm:$0xff]   ;;  %v3376_v17 = vld [vmem:[%s3684_s24 + $0x30] ss:$8 sps:$4 sm:$0xff]   ;;  %s538_s24 = scalar_lea.vmem %s4440_s10, %s3672_s25  ;;  %s4450_s25 = smov 96  }
  0x25   : > { %684 = vmatpush1.bf16.msra.mxu0 %v3358_v3  ;;  %s3532_s0 = smov [#allocation4]  }
  0x26   : > { %685 = vmatprep.subr.bf16.mxu0 %v3527_v1 }
  0x29   : > { %686 = vmatpush1.bf16.msra.mxu0 %v3359_v4 }
  0x2a   : > { %687 = vmatprep.subr.bf16.mxu0 %v3527_v1 }
  0x2d   : > { %688 = vmatpush1.bf16.msra.mxu0 %v3360_v6 }
  0x2e   : > { %689 = vmatprep.subr.bf16.mxu0 %v3527_v1 }
  0x31   : > { %690 = vmatpush1.bf16.msra.mxu0 %v3361_v7 }
  0x32   : > { %691 = vmatprep.subr.bf16.mxu0 %v3527_v1 }
  0x35   : > { %692 = vmatpush1.bf16.msra.mxu0 %v3362_v8 }
  0x36   : > { %693 = vmatprep.subr.bf16.mxu0 %v3527_v1 }
  0x39   : > { %694 = vmatpush1.bf16.msra.mxu0 %v3363_v9 }
  0x3a   : > { %695 = vmatprep.subr.bf16.mxu0 %v3527_v1 }
  0x3d   : > { %696 = vmatpush1.bf16.msra.mxu0 %v3364_v10 }
  0x3e   : > { %2991 = vmatprep.subr.bf16.mxu0 %v3377_v18 }
  0x40   : > { %712 = vmatmul.mubr.bf16.vlgmr.msra.gmra.mrb[0].mxu0 %v3365_v11 }
  0x41   : > { %2788 = vmatprep.mubr.msk.bf16.mxu0 %vm666_vm0, %v3368_v12  ;;  %2992 = vmatpush3.bf16.msra.mxu0 %v3377_v18 }
  0x42   : > { %2993 = vmatprep.subr.bf16.mxu0 %v3378_v19 }
  0x45   : > { %2994 = vmatpush3.bf16.msra.mxu0 %v3378_v19 }
  0x48   : > { %720 = vmatmul.mubr.bf16.gmra.mrb[4].mxu0 %v3370_v13 }
  0x49   : > { %2789 = vmatprep.mubr.msk.bf16.mxu0 %vm666_vm0, %v3371_v14 }
  0x50   : > { %728 = vmatmul.mubr.bf16.gmra.mrb[8].mxu0 %v3373_v15 }
  0x51   : > { %2790 = vmatprep.mubr.msk.bf16.mxu0 %vm666_vm0, %v3374_v16 }
  0x58   : > { %736 = vmatmul.mubr.bf16.gmra.mrb[12].mxu0 %v3376_v17 }
 0x113   : > { %v3733_v22 = vpop.f32.mrb[0].mxu0 }
 0x114   : > { %v751_v24 = vmul.f32 %v3731_v21, %v3733_v22  ;;  %v715_v25 = vpop.f32.mrb[1].mxu0 }
 0x115   : > { %v3742_v26 = vpop.f32.mrb[2].mxu0 }
 0x116   : > { %v766_v27 = vadd.f32 %v3738_v23, %v751_v24  ;;  %v752_v28 = vmul.f32 %v3731_v21, %v3742_v26  ;;  %v718_v29 = vpop.f32.mrb[3].mxu0 }
 0x118   : > { %v774_v30 = vmax.f32 %v766_v27, 0.0  ;;  %v767_v31 = vadd.f32 %v3738_v23, %v752_v28 }
 0x11a   : > { %v790_v32 = vrot.slane %v774_v30, 7  ;;  %v775_v33 = vmax.f32 %v767_v31, 0.0 }
 0x11b   : > { %v3748_v34 = vpop.f32.mrb[4].mxu0 }
 0x11c   : > { %v3754_v37 = vsel %vm806_vm1, 0.0, %v790_v32  ;;  %v815_v38 = vsel %vm806_vm1, %v790_v32, 0.0  ;;  %v791_v39 = vrot.slane %v775_v33, 7  ;;  %v753_v40 = vmul.f32 %v3731_v21, %v3748_v34  ;;  %v723_v41 = vpop.f32.mrb[5].mxu0 }
 0x11d   : > { %v849_v42 = vrot.slane %v3754_v37, 1  ;;  %v850_v43 = vrot.slane %v815_v38, 1  ;;  %v1069_v44 = vrot.slane %v3754_v37, 2  ;;  %v1070_v45 = vrot.slane %v815_v38, 2  ;;  %v3761_v46 = vpop.f32.mrb[6].mxu0 }
 0x11e   : > { %v3764_v47 = vsel %vm806_vm1, 0.0, %v791_v39  ;;  %v816_v48 = vsel %vm806_vm1, %v791_v39, 0.0  ;;  %v768_v49 = vadd.f32 %v3738_v23, %v753_v40  ;;  %v754_v50 = vmul.f32 %v3731_v21, %v3761_v46  ;;  %v726_v51 = vpop.f32.mrb[7].mxu0 }
 0x11f   : > { %v852_v52 = vrot.slane %v3764_v47, 1  ;;  %v853_v53 = vrot.slane %v816_v48, 1  ;;  %v1072_v54 = vrot.slane %v3764_v47, 2  ;;  %v1073_v55 = vrot.slane %v816_v48, 2 }
 0x120   : > { %v776_v56 = vmax.f32 %v768_v49, 0.0  ;;  %v769_v57 = vadd.f32 %v3738_v23, %v754_v50  ;;  %v3774_v58 = vsel %vm846_vm2, %v849_v42, %v850_v43  ;;  %v3785_v0 = vsel %vm1066_vm3, %v1069_v44, %v1070_v45 }
 0x121   : > { %v3777_v59 = vsel %vm846_vm2, %v852_v52, %v853_v53  ;;  %v3780_v60 = vsel %vm1066_vm3, %v1072_v54, %v1073_v55  ;;  %v878_v61 = vpack.c.bf16 %v3774_v58, %v3751_v36  ;;  %v1204_v1 = vpack.c.bf16 %v3764_v47, %v3754_v37 }
 0x122   : > { %v792_v62 = vrot.slane %v776_v56, 7  ;;  %v777_v63 = vmax.f32 %v769_v57, 0.0  ;;  %v1316_v3 = vpack.c.bf16 %v3777_v59, %v3774_v58  ;;  %v1426_v4 = vpack.c.bf16 %v3780_v60, %v3785_v0  ;;  %v3390_v58 = vld [vmem:[%s4434_s4 + $0x68] sm:$0xff]  }
 0x123   : > { %2995 = vmatprep.mubr.msk.bf16.mxu0 %vm899_vm4, %v878_v61  ;;  %v3790_v2 = vpop.f32.mrb[8].mxu0 }
 0x124   : > { %v3797_v5 = vsel %vm806_vm1, 0.0, %v792_v62  ;;  %v817_v6 = vsel %vm806_vm1, %v792_v62, 0.0  ;;  %v793_v7 = vrot.slane %v777_v63, 7  ;;  %v755_v8 = vmul.f32 %v3731_v21, %v3790_v2  ;;  %v731_v9 = vpop.f32.mrb[9].mxu0 }
 0x125   : > { %v3804_v10 = vpack.c.bf16 %v3797_v5, %v3764_v47  ;;  %v855_v11 = vrot.slane %v3797_v5, 1  ;;  %v856_v12 = vrot.slane %v817_v6, 1  ;;  %v1075_v13 = vrot.slane %v3797_v5, 2  ;;  %v3808_v14 = vpop.f32.mrb[10].mxu0  ;;  %v3389_v47 = vld [vmem:[%s4434_s4 + $0x60] sm:$0xff]  }
 0x126   : > { %v1076_v15 = vrot.slane %v817_v6, 2  ;;  %v3811_v16 = vsel %vm806_vm1, 0.0, %v793_v7  ;;  %v818_v17 = vsel %vm806_vm1, %v793_v7, 0.0  ;;  %v770_v18 = vadd.f32 %v3738_v23, %v755_v8  ;;  %v734_v19 = vpop.f32.mrb[11].mxu0 }
 0x127   : > { %v3816_v24 = vsel %vm846_vm2, %v855_v11, %v856_v12  ;;  %v1078_v25 = vrot.slane %v3811_v16, 2  ;;  %v1079_v27 = vrot.slane %v818_v17, 2  ;;  %v1205_v28 = vpack.c.bf16 %v3811_v16, %v3797_v5 }
 0x128   : > { %v3823_v29 = vpack.c.bf16 %v3816_v24, %v3777_v59  ;;  %v3826_v30 = vsel %vm1066_vm3, %v1075_v13, %v1076_v15  ;;  %v778_v31 = vmax.f32 %v770_v18, 0.0  ;;  %v756_v32 = vmul.f32 %v3731_v21, %v3808_v14  ;;  %v3391_v59 = vld [vmem:[%s4434_s4 + $0x70] sm:$0xff]  }
 0x129   : > { %v3832_v33 = vpack.c.bf16 %v3826_v30, %v3780_v60  ;;  %v858_v38 = vrot.slane %v3811_v16, 1  ;;  %v859_v39 = vrot.slane %v818_v17, 1  ;;  %v3836_v40 = vsel %vm1066_vm3, %v1078_v25, %v1079_v27  ;;  %v3392_v60 = vld [vmem:[%s4434_s4 + $0x78] sm:$0xff]  }
 0x12a   : > { %v794_v41 = vrot.slane %v778_v31, 7  ;;  %v771_v42 = vadd.f32 %v3738_v23, %v756_v32  ;;  %2996 = vmatmul.mubr.msk.bf16.vlgmr.msra.gmra.mrb[16].mxu0 %vm899_vm4, %v3823_v29  ;;  %v1427_v43 = vpack.c.bf16 %v3836_v40, %v3826_v30  ;;  %v1861_v30 = vld [vmem:[%s4435_s5 + $0x18] sm:$0xff] }
 0x12b   : > { %v3843_v44 = vpop.f32.mrb[12].mxu0  ;;  %v3846_v45 = vsel %vm846_vm2, %v858_v38, %v859_v39  ;;  %3107 = vmatprep.mubr.msk.f32.mxu0 %vm3530_vm5, %v3528_v35 }
 0x12c   : > { %v3849_v48 = vsel %vm806_vm1, 0.0, %v794_v41  ;;  %v819_v49 = vsel %vm806_vm1, %v794_v41, 0.0  ;;  %v779_v50 = vmax.f32 %v771_v42, 0.0  ;;  %v757_v51 = vmul.f32 %v3731_v21, %v3843_v44  ;;  %v739_v52 = vpop.f32.mrb[13].mxu0 }
 0x12d   : > { %v1081_v53 = vrot.slane %v3849_v48, 2  ;;  %v1082_v54 = vrot.slane %v819_v49, 2  ;;  %v3855_v55 = vpop.f32.mrb[14].mxu0  ;;  %v861_v56 = vrot.slane %v3849_v48, 1  ;;  %v862_v57 = vrot.slane %v819_v49, 1 }
 0x12e   : > { %v795_v61 = vrot.slane %v779_v50, 7  ;;  %v772_v62 = vadd.f32 %v3738_v23, %v757_v51  ;;  %v758_v63 = vmul.f32 %v3731_v21, %v3855_v55  ;;  %v742_v6 = vpop.f32.mrb[15].mxu0  ;;  %v1317_v7 = vpack.c.bf16 %v3846_v45, %v3816_v24  ;;  %v1859_v24 = vld [vmem:[%s4435_s5 + $0x8] sm:$0xff] }
 0x12f   : > { %v3864_v8 = vsel %vm846_vm2, %v861_v56, %v862_v57  ;;  %v3868_v9 = vpack.c.bf16 %v3849_v48, %v3811_v16  ;;  %v3871_v11 = vsel %vm1066_vm3, %v1081_v53, %v1082_v54  ;;  %v1858_v16 = vld [vmem:[%s4435_s5] sm:$0xff] }
 0x130   : > { %v3874_v12 = vsel %vm806_vm1, 0.0, %v795_v61  ;;  %v820_v13 = vsel %vm806_vm1, %v795_v61, 0.0  ;;  %v780_v21 = vmax.f32 %v772_v62, 0.0  ;;  %v773_v15 = vadd.f32 %v3738_v23, %v758_v63 }
 0x131   : > { %v865_v17 = vrot.slane %v820_v13, 1  ;;  %v1084_v18 = vrot.slane %v3874_v12, 2  ;;  %v1085_v19 = vrot.slane %v820_v13, 2  ;;  %v864_v25 = vrot.slane %v3874_v12, 1 }
 0x132   : > { %v796_v27 = vrot.slane %v780_v21, 7  ;;  %v781_v31 = vmax.f32 %v773_v15, 0.0  ;;  %v3882_v32 = vpack.c.bf16 %v3864_v8, %v3846_v45  ;;  %v3886_v38 = vpack.c.bf16 %v3871_v11, %v3836_v40 }
 0x133   : > { %v3889_v39 = vsel %vm846_vm2, %v864_v25, %v865_v17  ;;  %v3892_v23 = vrot.slane %v3528_v35, 2  ;;  %v3895_v41 = vsel %vm1066_vm3, %v1084_v18, %v1085_v19  ;;  %v1206_v42 = vpack.c.bf16 %v3874_v12, %v3849_v48 }
 0x134   : > { %v3900_v49 = vsel %vm806_vm1, 0.0, %v796_v27  ;;  %v821_v50 = vsel %vm806_vm1, %v796_v27, 0.0  ;;  %v797_v51 = vrot.slane %v781_v31, 7  ;;  %2999 = vmatprep.mubr.msk.bf16.mxu1 %vm899_vm4, %v3882_v32  ;;  %v1318_v52 = vpack.c.bf16 %v3889_v39, %v3864_v8  ;;  %v3380_v27 = vld [vmem:[%s4434_s4 + $0x8] sm:$0xff]  }
 0x135   : > { %v867_v53 = vrot.slane %v3900_v49, 1  ;;  %v868_v54 = vrot.slane %v821_v50, 1  ;;  %v1087_v56 = vrot.slane %v3900_v49, 2  ;;  %v1088_v57 = vrot.slane %v821_v50, 2 }
 0x136   : > { %v3910_v48 = vsel %vm806_vm1, 0.0, %v797_v51  ;;  %v822_v61 = vsel %vm806_vm1, %v797_v51, 0.0  ;;  %v3915_v62 = vpack.c.bf16 %v3900_v49, %v3874_v12  ;;  %v1428_v63 = vpack.c.bf16 %v3895_v41, %v3871_v11 }
 0x137   : > { %v1312_v6 = vrot.slane %v3910_v48, 1  ;;  %v1313_v13 = vrot.slane %v822_v61, 1  ;;  %v1422_v21 = vrot.slane %v3910_v48, 2  ;;  %v1423_v15 = vrot.slane %v822_v61, 2  ;;  %v3382_v61 = vld [vmem:[%s4434_s4 + $0x28] sm:$0xff]  }
 0x138   : > { %v869_v17 = vsel %vm846_vm2, %v867_v53, %v868_v54  ;;  %v823_v18 = vpack.c.bf16 %v3754_v37, %v3528_v35  ;;  %v3925_v19 = vsel %vm1066_vm3, %v1087_v56, %v1088_v57  ;;  %v1207_v12 = vpack.c.bf16 %v3910_v48, %v3900_v49  ;;  %v3381_v57 = vld [vmem:[%s4434_s4 + $0x20] sm:$0xff]   ;;  %v3388_v37 = vld [vmem:[%s4434_s4 + $0x58] sm:$0xff]  }
 0x139   : > { %v3930_v25 = vpack.c.bf16 %v869_v17, %v3889_v39  ;;  %v3937_v31 = vpack.c.bf16 %v3925_v19, %v3895_v41  ;;  %v3940_v50 = vsel %vm846_vm2, %v1312_v6, %v1313_v13  ;;  %v3943_v51 = vsel %vm1066_vm3, %v1422_v21, %v1423_v15  ;;  %v3384_v13 = vld [vmem:[%s4434_s4 + $0x38] sm:$0xff]   ;;  %v3385_v21 = vld [vmem:[%s4434_s4 + $0x40] sm:$0xff]   ;;  %v3386_v15 = vld [vmem:[%s4434_s4 + $0x48] sm:$0xff]  }
 0x13a   : > { %v1319_v53 = vpack.c.bf16 %v3940_v50, %v869_v17  ;;  %v1429_v49 = vpack.c.bf16 %v3943_v51, %v3925_v19  ;;  %v1626_v54 = vpack.c.bf16 %v3751_v36, %v3940_v50  ;;  %v1720_v56 = vpack.c.bf16 %v3892_v23, %v3943_v51  ;;  %v3387_v17 = vld [vmem:[%s4434_s4 + $0x50] sm:$0xff]  }
 0x13b   : > { %3000 = vmatmul.mubr.msk.bf16.vlgmr.msra.gmra.mrb[0].mxu1 %vm899_vm4, %v3930_v25  ;;  %v1098_v6 = vpack.c.bf16 %v3785_v0, %v3892_v23  ;;  %v3393_v0 = vld [vmem:[%s4434_s4 + $0x80] sm:$0xff]  }
 0x13c   : > { %3004 = vmatpush3.bf16.msra.mxu1 %v3725_v20  ;;  %3007 = vmatprep.mubr.msk.bf16.mxu1 %vm899_vm4, %v823_v18  ;;  %v3383_v20 = vld [vmem:[%s4434_s4 + $0x30] sm:$0xff]  }
 0x13d   : > { %3005 = vmatprep.subr.bf16.mxu1 %v3380_v27 }
 0x140   : > { %3006 = vmatpush3.bf16.msra.mxu1 %v3380_v27 }
 0x141   : > { %3015 = vmatprep.subr.bf16.mxu1 %v3381_v57 }
 0x143   : > { %3008 = vmatmul.mubr.msk.bf16.vlgmr.msra.gmra.mrb[4].mxu1 %vm899_vm4, %v3804_v10 }
 0x144   : > { %3016 = vmatpush3.bf16.msra.mxu1 %v3381_v57  ;;  %3011 = vmatprep.mubr.msk.bf16.mxu1 %vm899_vm4, %v3868_v9 }
 0x145   : > { %3017 = vmatprep.subr.bf16.mxu1 %v3382_v61 }
 0x148   : > { %3018 = vmatpush3.bf16.msra.mxu1 %v3382_v61 }
 0x149   : > { %3027 = vmatprep.subr.bf16.mxu1 %v3383_v20 }
 0x14b   : > { %3012 = vmatmul.mubr.msk.bf16.gmra.mrb[0].mxu1 %vm899_vm4, %v3915_v62 }
 0x14c   : > { %3019 = vmatprep.mubr.msk.bf16.mxu1 %vm899_vm4, %v1098_v6 }
 0x153   : > { %3020 = vmatmul.mubr.msk.bf16.vlgmr.msra.gmra.mrb[4].mxu1 %vm899_vm4, %v3832_v33 }
 0x154   : > { %3028 = vmatpush3.bf16.msra.mxu1 %v3383_v20  ;;  %3023 = vmatprep.mubr.msk.bf16.mxu1 %vm899_vm4, %v3886_v38 }
 0x155   : > { %3029 = vmatprep.subr.bf16.mxu1 %v3384_v13 }
 0x158   : > { %3030 = vmatpush3.bf16.msra.mxu1 %v3384_v13 }
 0x159   : > { %3039 = vmatprep.subr.bf16.mxu1 %v3385_v21 }
 0x15b   : > { %3024 = vmatmul.mubr.msk.bf16.gmra.mrb[0].mxu1 %vm899_vm4, %v3937_v31 }
 0x15c   : > { %3031 = vmatprep.mubr.msk.bf16.mxu1 %vm899_vm4, %v1204_v1  ;;  %v1532_v1 = vpack.c.bf16 %v3528_v35, %v3910_v48 }
 0x163   : > { %3032 = vmatmul.mubr.msk.bf16.vlgmr.msra.gmra.mrb[4].mxu1 %vm899_vm4, %v1205_v28  ;;  %v4084_v28 = vpack.c.bf16 %v1859_v24, %v1858_v16  ;;  %v1937_v24 = vld [vmem:[%s4437_s7] sm:$0x3] }
 0x164   : > { %3040 = vmatpush3.bf16.msra.mxu1 %v3385_v21  ;;  %3035 = vmatprep.mubr.msk.bf16.mxu1 %vm899_vm4, %v1206_v42 }
 0x165   : > { %3041 = vmatprep.subr.bf16.mxu1 %v3386_v15 }
 0x168   : > { %3042 = vmatpush3.bf16.msra.mxu1 %v3386_v15 }
 0x169   : > { %3051 = vmatprep.subr.bf16.mxu1 %v3387_v17 }
 0x16b   : > { %3036 = vmatmul.mubr.msk.bf16.gmra.mrb[0].mxu1 %vm899_vm4, %v1207_v12 }
 0x16c   : > { %3043 = vmatprep.mubr.msk.bf16.mxu1 %vm899_vm4, %v1316_v3  ;;  %v3394_v3 = vld [vmem:[%s4434_s4 + $0x88] sm:$0xff]  }
 0x173   : > { %3044 = vmatmul.mubr.msk.bf16.vlgmr.msra.gmra.mrb[4].mxu1 %vm899_vm4, %v1317_v7 }
 0x174   : > { %3052 = vmatpush3.bf16.msra.mxu1 %v3387_v17  ;;  %3047 = vmatprep.mubr.msk.bf16.mxu1 %vm899_vm4, %v1318_v52 }
 0x175   : > { %3053 = vmatprep.subr.bf16.mxu1 %v3388_v37 }
 0x178   : > { %3054 = vmatpush3.bf16.msra.mxu1 %v3388_v37 }
 0x179   : > { %3063 = vmatprep.subr.bf16.mxu1 %v3389_v47 }
 0x17b   : > { %3048 = vmatmul.mubr.msk.bf16.gmra.mrb[0].mxu1 %vm899_vm4, %v1319_v53 }
 0x17c   : > { %3055 = vmatprep.mubr.msk.bf16.mxu1 %vm899_vm4, %v1426_v4 }
 0x183   : > { %3056 = vmatmul.mubr.msk.bf16.vlgmr.msra.gmra.mrb[4].mxu1 %vm899_vm4, %v1427_v43 }
 0x184   : > { %3064 = vmatpush3.bf16.msra.mxu1 %v3389_v47  ;;  %3059 = vmatprep.mubr.msk.bf16.mxu1 %vm899_vm4, %v1428_v63 }
 0x185   : > { %3065 = vmatprep.subr.bf16.mxu1 %v3390_v58 }
 0x188   : > { %3066 = vmatpush3.bf16.msra.mxu1 %v3390_v58 }
 0x189   : > { %3075 = vmatprep.subr.bf16.mxu1 %v3391_v59 }
 0x18b   : > { %3060 = vmatmul.mubr.msk.bf16.gmra.mrb[0].mxu1 %vm899_vm4, %v1429_v49 }
 0x18c   : > { %3067 = vmatprep.mubr.msk.bf16.mxu1 %vm899_vm4, %v3804_v10 }
 0x193   : > { %3068 = vmatmul.mubr.msk.bf16.vlgmr.msra.gmra.mrb[4].mxu1 %vm899_vm4, %v3868_v9 }
 0x194   : > { %3076 = vmatpush3.bf16.msra.mxu1 %v3391_v59  ;;  %3071 = vmatprep.mubr.msk.bf16.mxu1 %vm899_vm4, %v3915_v62 }
 0x195   : > { %3077 = vmatprep.subr.bf16.mxu1 %v3392_v60 }
 0x198   : > { %3078 = vmatpush3.bf16.msra.mxu1 %v3392_v60 }
 0x199   : > { %3087 = vmatprep.subr.bf16.mxu1 %v3393_v0 }
 0x19b   : > { %3072 = vmatmul.mubr.msk.bf16.gmra.mrb[0].mxu1 %vm899_vm4, %v1532_v1 }
 0x19c   : > { %3079 = vmatprep.mubr.msk.bf16.mxu1 %vm899_vm4, %v3823_v29  ;;  %v1860_v29 = vld [vmem:[%s4435_s5 + $0x10] sm:$0xff] }
 0x19d   : > { %v4096_v40 = vpack.c.bf16 %v1861_v30, %v1860_v29 }
 0x1a3   : > { %3080 = vmatmul.mubr.msk.bf16.vlgmr.msra.gmra.mrb[4].mxu1 %vm899_vm4, %v3882_v32 }
 0x1a4   : > { %3088 = vmatpush3.bf16.msra.mxu1 %v3393_v0  ;;  %3083 = vmatprep.mubr.msk.bf16.mxu1 %vm899_vm4, %v3930_v25 }
 0x1a5   : > { %3089 = vmatprep.subr.bf16.mxu1 %v3394_v3 }
 0x1a8   : > { %3090 = vmatpush3.bf16.msra.mxu1 %v3394_v3 }
 0x1ab   : > { %3084 = vmatmul.mubr.msk.bf16.gmra.mrb[0].mxu1 %vm899_vm4, %v1626_v54 }
 0x1ac   : > { %3091 = vmatprep.mubr.msk.bf16.mxu1 %vm899_vm4, %v3832_v33  ;;  %v3529_v33 = vmov 0.0|0.0  }
 0x1ad   : > { %3182 = vmatprep.subr.bf16.mxu0 %v3529_v33 }
 0x1ae   : > { %3184 = vmatpush3.bf16.msra.mxu0 %v4084_v28 }
 0x1af   : > { %3185 = vmatprep.subr.bf16.mxu0 %v3529_v33 }
 0x1b2   : > { %3187 = vmatpush3.bf16.msra.mxu0 %v4096_v40 }
 0x1b3   : > { %3092 = vmatmul.mubr.msk.bf16.vlgmr.msra.gmra.mrb[4].mxu1 %vm899_vm4, %v3886_v38  ;;  %3110 = vmatprep.subr.mxu0 %v3528_v35 }
 0x1b4   : > { %3095 = vmatprep.mubr.msk.bf16.mxu1 %vm899_vm4, %v3937_v31 }
 0x1bb   : > { %3096 = vmatmul.mubr.msk.bf16.gmra.mrb[0].mxu1 %vm899_vm4, %v1720_v56 }
 0x1fd   : > { %v2997_v4 = vpop.f32.mrb[16].mxu0 }
 0x1fe   : > { %v946_v5 = vpop.f32.mrb[17].mxu0 }
 0x1ff   : > { %v2998_v10 = vpop.f32.mrb[18].mxu0 }
 0x200   : > { %v949_v36 = vpop.f32.mrb[19].mxu0 }
 0x286   : > { %v3093_v43 = vpop.f32.mrb[4].mxu1 }
 0x287   : > { %v4101_v45 = vadd.f32 %v3093_v43, %v2997_v4  ;;  %v1775_v7 = vpop.f32.mrb[5].mxu1  ;;  %v1862_v43 = vld [vmem:[%s4436_s6] sm:$0x1] }
 0x288   : > { %v4103_v8 = vadd.f32 %v1775_v7, %v946_v5  ;;  %v3094_v9 = vpop.f32.mrb[6].mxu1 }
 0x289   : > { %v4105_v11 = vadd.f32 %v3094_v9, %v2998_v10  ;;  %v1778_v32 = vpop.f32.mrb[7].mxu1  ;;  %v1817_v42 = vsel %vm899_vm4, %v4101_v45, 0.0  ;;  %v1839_v18 = vsel %vm899_vm4, %v4101_v45, -inf }
 0x28a   : > { %v4107_v38 = vadd.f32 %v1778_v32, %v949_v36  ;;  %v1814_v39 = vsel %vm899_vm4, %v4103_v8, 0.0  ;;  %v1837_v19 = vsel %vm899_vm4, %v4103_v8, -inf }
 0x28b   : > { %v1819_v12 = vsel %vm899_vm4, %v4105_v11, 0.0  ;;  %v1840_v31 = vsel %vm899_vm4, %v4105_v11, -inf }
 0x28c   : > { %v1815_v23 = vsel %vm899_vm4, %v4107_v38, 0.0  ;;  %v1838_v49 = vsel %vm899_vm4, %v4107_v38, -inf }
 0x28d   : > { %v1816_v41 = vadd.f32 %v1815_v23, %v1814_v39 }
 0x28e   : > { %v4115_v52 = vpop.f32.mrb[0].mxu1 }
 0x28f   : > { %v1818_v48 = vadd.f32 %v1817_v42, %v1816_v41  ;;  %v1845_v62 = vsel %vm899_vm4, %v4115_v52, -inf  ;;  %v4119_v63 = vpop.f32.mrb[1].mxu1  ;;  %v1825_v47 = vsel %vm899_vm4, %v4115_v52, 0.0 }
 0x290   : > { %v1841_v25 = vsel %vm899_vm4, %v4119_v63, -inf  ;;  %v4129_v27 = vpop.f32.mrb[2].mxu1  ;;  %v1846_v54 = vmax.f32 %v1839_v18, %v1845_v62  ;;  %v1821_v56 = vsel %vm899_vm4, %v4119_v63, 0.0 }
 0x291   : > { %v1820_v50 = vadd.f32 %v1819_v12, %v1818_v48  ;;  %v1847_v51 = vsel %vm899_vm4, %v4129_v27, -inf  ;;  %v4135_v53 = vpop.f32.mrb[3].mxu1  ;;  %v1842_v6 = vmax.f32 %v1837_v19, %v1841_v25  ;;  %v1827_v60 = vsel %vm899_vm4, %v4129_v27, 0.0 }
 0x292   : > { %v1848_v57 = vmax.f32 %v1840_v31, %v1847_v51  ;;  %v1843_v61 = vsel %vm899_vm4, %v4135_v53, -inf  ;;  %v1823_v15 = vsel %vm899_vm4, %v4135_v53, 0.0  ;;  %v1938_v31 = vld [vmem:[%s4438_s8] sm:$0x1] }
 0x293   : > { %v1822_v20 = vadd.f32 %v1821_v56, %v1820_v50  ;;  %v1844_v13 = vmax.f32 %v1838_v49, %v1843_v61  ;;  %v3237_v50 = vadd.f32 %v1938_v31, %v1938_v31 }
 0x294   : > { %v1850_v21 = vmax.f32 %v1846_v54, %v1848_v57 }
 0x295   : > { %v1824_v17 = vadd.f32 %v1823_v15, %v1822_v20  ;;  %v1849_v37 = vmax.f32 %v1842_v6, %v1844_v13  ;;  %v2249_v20 = vlaneseq }
 0x297   : > { %v1826_v58 = vadd.f32 %v1825_v47, %v1824_v17  ;;  %v1851_v59 = vmax.f32 %v1849_v37, %v1850_v21  ;;  %v2250_v6 = vshrl.u32 %v2249_v20, 7 }
 0x299   : > { %v1828_v0 = vadd.f32 %v1827_v60, %v1826_v58  ;;  %v1852_v29 = vrot.slane %v1851_v59, 4  ;;  %v2251_v13 = vsub.s32 0, %v2250_v6 }
 0x29b   : > { %v1829_v1 = vrot.slane %v1828_v0, 4  ;;  %v1853_v30 = vmax.f32 %v1851_v59, %v1852_v29 }
 0x29d   : > { %v1830_v3 = vadd.f32 %v1829_v1, %v1828_v0  ;;  %v1854_v7 = vrot.slane %v1853_v30, 2 }
 0x29f   : > { %v1831_v4 = vrot.slane %v1830_v3, 2  ;;  %v1855_v23 = vmax.f32 %v1853_v30, %v1854_v7  ;;  %v2318_v30 = vld [vmem:[%s4441_s11] sm:$0xff] }
 0x2a1   : > { %v1832_v5 = vadd.f32 %v1831_v4, %v1830_v3  ;;  %v1856_v42 = vrot.slane %v1855_v23, 1 }
 0x2a3   : > { %v1833_v10 = vrot.slane %v1832_v5, 1  ;;  %v1857_v48 = vmax.f32 %v1855_v23, %v1856_v42 }
 0x2a5   : > { %v1834_v36 = vadd.f32 %v1833_v10, %v1832_v5 }
 0x2a7   : > { %v1836_v16 = vmul.f32 0.015625, %v1834_v36 }
 0x2a9   : > { %3108 = vmatmul.mubr.msk.f32.vlgmr.msra.gmra.mrb[20].mxu0 %vm899_vm4, %v1836_v16 }
 0x2aa   : > { %3112 = vmatprep.mubr.msk.f32.mxu0 %vm3530_vm5, %v3528_v35  ;;  %3111 = vmatpush3.msk.msra.mxu0 %vm1943_vm6, %v1937_v24 }
 0x2ab   : > { %3188 = vmatprep.subr.bf16.mxu0 %v3529_v33 }
 0x37c   : > { %v1932_v9 = vpop.f32.mrb[20].mxu0 }
 0x37d   : > { %v1933_v32 = vadd.f32 %v1932_v9, %v1862_v43  ;;  %v3109_v39 = vpop.f32.mrb[21].mxu0 }
 0x37f   : > { %v1936_v41 = vmax.f32 %v1933_v32, 0.0 }
 0x381   : > { %3113 = vmatmul.mubr.msk.f32.vlgmr.msra.gmra.mrb[22].mxu0 %vm1939_vm7, %v1936_v41 }
 0x382   : > { %3190 = vmatpush3.bf16.msra.mxu0 %v4084_v28  ;;  %3123 = vmatprep.mubr.msk.f32.mxu0 %vm3530_vm5, %v3528_v35  ;;  %v2166_v28 = vld [vmem:[%s4439_s9] sm:$0xff] }
 0x383   : > { %3191 = vmatprep.subr.bf16.mxu0 %v3529_v33 }
 0x386   : > { %3193 = vmatpush3.bf16.msra.mxu0 %v4096_v40  ;;  %v2167_v40 = vld [vmem:[%s4439_s9 + $0x8] sm:$0xff] }
 0x387   : > { %3126 = vmatprep.subr.mxu0 %v3528_v35  ;;  %v3195_v12 = vpack.c.bf16 %v2167_v40, %v2166_v28 }
 0x389   : > { %3124 = vmatmul.mubr.msk.f32.vlgmr.msra.gmra.mrb[24].mxu0 %vm899_vm4, %v1857_v48 }
 0x38a   : > { %3127 = vmatpush3.msk.msra.mxu0 %vm1943_vm6, %v1937_v24  ;;  %3128 = vmatprep.mubr.msk.f32.mxu0 %vm3530_vm5, %v3528_v35 }
 0x38b   : > { %3194 = vmatprep.subr.bf16.mxu0 %v3529_v33  ;;  %v2165_v33 = vld [vmem:[%s538_s24] sm:$0x1] }
 0x45c   : > { %v2086_v62 = vpop.f32.mrb[24].mxu0 }
 0x45d   : > { %v2087_v18 = vadd.f32 %v2086_v62, %v1862_v43  ;;  %v3125_v19 = vpop.f32.mrb[25].mxu0 }
 0x45f   : > { %v2090_v25 = vmax.f32 %v2087_v18, 0.0 }
 0x461   : > { %3129 = vmatmul.mubr.msk.f32.vlgmr.msra.gmra.mrb[22].mxu0 %vm1939_vm7, %v2090_v25 }
 0x462   : > { %3196 = vmatpush3.bf16.msra.mxu0 %v3195_v12  ;;  %3135 = vmatprep.mubr.msk.f32.mxu0 %vm3530_vm5, %v3528_v35 }
 0x469   : > { %3136 = vmatmul.mubr.msk.f32.vlgmr.msra.gmra.mrb[22].mxu0 %vm666_vm0, %v2165_v33 }
 0x46a   : > { %3170 = vmatprep.mubr.f32.mxu0 %v2318_v30 }
 0x53c   : > { %v2237_v51 = vpop.f32.mrb[22].mxu0 }
 0x53d   : > { %v3238_v49 = vadd.f32 %v3237_v50, %v2237_v51  ;;  %v3137_v35 = vpop.f32.mrb[23].mxu0 }
 0x53f   : > { %v2244_v54 = vsub.f32 0.0, %v3238_v49  ;;  %2243 = vst.msk [vmem:[%s4449_s16] sm:$0x1] %vm2242_vm8, %v3238_v49  ;;  %s2623_s16 = sshll.u32 %s4466_s20, 4  ;;  %s2624_s16 = int_to_ptr.vmem [resolvable:$true] %s2623_s16 }
 0x540   : > { %s3431_s1 = scalar_lea.vmem %s2624_s16, 16 }
 0x541   : > { %v2245_v56 = vmul.f32 1.442695, %v2244_v54  ;;  %p3432_p11 = scmp.ne.s32.totalorder %s2624_s16, %s3431_s1 }
 0x543   : > { %3395 = vpow2.f32 %v2245_v56  ;;  %p3433_p12 = pnand %p3432_p11, %p3654_p5 }
 0x545   : > { %p3434_p13 = pneg %p3433_p12 }
 0x54d   : > { %v3396_v57 = vpop.eup %3395 }
 0x54e   : > { %v2247_v61 = vadd.f32 1.0, %v3396_v57 }
 0x550   : > { %3397 = vrcp.f32 %v2247_v61 }
 0x55a   : > { %v3398_v21 = vpop.eup %3397 }
 0x55b   : > { %v2252_v15 = vrot.slane %v3398_v21, %v2251_v13 }
 0x55d   : > { %v4196_v17 = vmul.f32 %v4101_v45, %v2252_v15  ;;  %v4199_v37 = vmul.f32 %v4103_v8, %v2252_v15  ;;  %v4202_v47 = vmul.f32 %v2252_v15, %v4135_v53  ;;  %v4205_v58 = vmul.f32 %v2252_v15, %v4119_v63 }
 0x55e   : > { %v4208_v59 = vmul.f32 %v4129_v27, %v2252_v15  ;;  %v4211_v60 = vmul.f32 %v4115_v52, %v2252_v15  ;;  %v4218_v8 = vmul.f32 %v4105_v11, %v2252_v15  ;;  %v4221_v53 = vmul.f32 %v4107_v38, %v2252_v15  ;;  %v2319_v15 = vld [vmem:[%s4441_s11 + $0x8] sm:$0xff] }
 0x55f   : > { %v2267_v0 = vsel %vm899_vm4, %v4196_v17, -inf  ;;  %v2261_v45 = vsel %vm899_vm4, %v4199_v37, -inf  ;;  %v2276_v27 = vsel %vm899_vm4, %v4202_v47, -inf  ;;  %v2273_v11 = vsel %vm899_vm4, %v4205_v58, -inf }
 0x560   : > { %2268 = vmax.xlane.f32.xlu1 %v2267_v0  ;;  %2262 = vmax.xlane.f32.xlu0 %v2261_v45  ;;  %v2270_v63 = vsel %vm899_vm4, %v4218_v8, -inf  ;;  %v2264_v52 = vsel %vm899_vm4, %v4221_v53, -inf  ;;  %v2282_v38 = vsel %vm899_vm4, %v4208_v59, -inf  ;;  %v2279_v1 = vsel %vm899_vm4, %v4211_v60, -inf  ;;  %v2320_v0 = vld [vmem:[%s4441_s11 + $0x10] sm:$0xff]  ;;  %v2321_v45 = vld [vmem:[%s4441_s11 + $0x18] sm:$0xff] }
 0x561   : > { %v2288_v3 = vsel %vm899_vm4, %v4221_v53, 0.0  ;;  %v2285_v4 = vsel %vm899_vm4, %v4199_v37, 0.0  ;;  %v2294_v5 = vsel %vm899_vm4, %v4218_v8, 0.0  ;;  %v2291_v10 = vsel %vm899_vm4, %v4196_v17, 0.0 }
 0x562   : > { %v2300_v36 = vsel %vm899_vm4, %v4202_v47, 0.0  ;;  %v2297_v16 = vsel %vm899_vm4, %v4205_v58, 0.0  ;;  %v2306_v24 = vsel %vm899_vm4, %v4208_v59, 0.0  ;;  %v2303_v29 = vsel %vm899_vm4, %v4211_v60, 0.0 }
 0x564   : > { %2271 = vmax.xlane.f32.xlu1 %v2270_v63  ;;  %2265 = vmax.xlane.f32.xlu0 %v2264_v52  ;;  %v2322_v63 = vld [vmem:[%s4441_s11 + $0x20] sm:$0xff]  ;;  %v2323_v52 = vld [vmem:[%s4441_s11 + $0x28] sm:$0xff] }
 0x568   : > { %2277 = vmax.xlane.f32.xlu1 %v2276_v27  ;;  %2274 = vmax.xlane.f32.xlu0 %v2273_v11  ;;  %v2324_v27 = vld [vmem:[%s4441_s11 + $0x30] sm:$0xff]  ;;  %v2325_v11 = vld [vmem:[%s4441_s11 + $0x38] sm:$0xff] }
 0x56c   : > { %2283 = vmax.xlane.f32.xlu1 %v2282_v38  ;;  %2280 = vmax.xlane.f32.xlu0 %v2279_v1 }
 0x570   : > { %2289 = vadd.xlane.f32.xlu1 %v2288_v3  ;;  %2286 = vadd.xlane.f32.xlu0 %v2285_v4 }
 0x574   : > { %2295 = vadd.xlane.f32.xlu1 %v2294_v5  ;;  %2292 = vadd.xlane.f32.xlu0 %v2291_v10 }
 0x578   : > { %2301 = vadd.xlane.f32.xlu1 %v2300_v36  ;;  %2298 = vadd.xlane.f32.xlu0 %v2297_v16 }
 0x57c   : > { %2307 = vadd.xlane.f32.xlu1 %v2306_v24  ;;  %2304 = vadd.xlane.f32.xlu0 %v2303_v29 }
 0x58d   : > { %2544 = vrot.lane.b32.xlu1 %v3733_v22, %s4450_s25 }
 0x592   : > { %2546 = vrot.lane.b32.xlu0 %v3742_v26, %s4450_s25  ;;  %s4283_s25 = scalar_lea.vmem %s4442_s12, %s3675_s26  ;;  %s2889_s26 = sshll.u32 %s3637_s22, 4 }
 0x593   : > { %v2327_v38 = vld [vmem:[%s4283_s25 + $0x8] sm:$0xff]  ;;  %v2326_v1 = vld [vmem:[%s4283_s25] sm:$0xff]  ;;  %v2329_v36 = vld [vmem:[%s4283_s25 + $0x18] sm:$0xff]  ;;  %s4331_s23 = scalar_lea.hbm %s4444_s14, %s2889_s26 }
 0x594   : > { %v2328_v24 = vld [vmem:[%s4283_s25 + $0x10] sm:$0xff] }
 0x5ed   : > { %v2269_v43 = vpop.xlane.xlu1 %2268  ;;  %v2263_v7 = vpop.xlane.xlu0 %2262 }
 0x5f1   : > { %v2272_v9 = vpop.xlane.xlu1 %2271  ;;  %v2266_v32 = vpop.xlane.xlu0 %2265 }
 0x5f2   : > { %v3197_v39 = vpack.c.bf16 %v2266_v32, %v2263_v7  ;;  %v3201_v23 = vpack.c.bf16 %v2272_v9, %v2269_v43 }
 0x5f4   : > { %3198 = vmatprep.subr.bf16.mxu0 %v3197_v39 }
 0x5f5   : > { %v2278_v41 = vpop.xlane.xlu1 %2277  ;;  %3200 = vmatpush3.bf16.msra.mxu0 %v3197_v39  ;;  %v2275_v42 = vpop.xlane.xlu0 %2274 }
 0x5f6   : > { %3202 = vmatprep.subr.bf16.mxu0 %v3201_v23  ;;  %v3205_v22 = vpack.c.bf16 %v2278_v41, %v2275_v42  ;;  %v2330_v42 = vld [vmem:[%s4283_s25 + $0x20] sm:$0xff] }
 0x5f9   : > { %v2284_v48 = vpop.xlane.xlu1 %2283  ;;  %3204 = vmatpush3.bf16.msra.mxu0 %v3201_v23  ;;  %v2281_v28 = vpop.xlane.xlu0 %2280  ;;  %v2331_v23 = vld [vmem:[%s4283_s25 + $0x28] sm:$0xff] }
 0x5fa   : > { %3206 = vmatprep.subr.bf16.mxu0 %v3205_v22  ;;  %v3209_v40 = vpack.c.bf16 %v2284_v48, %v2281_v28 }
 0x5fd   : > { %v2290_v62 = vpop.xlane.xlu1 %2289  ;;  %3208 = vmatpush3.bf16.msra.mxu0 %v3205_v22  ;;  %v2287_v26 = vpop.xlane.xlu0 %2286 }
 0x5fe   : > { %v2311_v18 = vmul.f32 0.03125, %v2290_v62  ;;  %v2310_v19 = vmul.f32 0.03125, %v2287_v26  ;;  %3210 = vmatprep.subr.bf16.mxu0 %v3209_v40 }
 0x600   : > { %v3213_v12 = vpack.c.bf16 %v2311_v18, %v2310_v19  ;;  %v2333_v19 = vld [vmem:[%s4283_s25 + $0x38] sm:$0xff] }
 0x601   : > { %v2296_v25 = vpop.xlane.xlu1 %2295  ;;  %3212 = vmatpush3.bf16.msra.mxu0 %v3209_v40  ;;  %v2293_v33 = vpop.xlane.xlu0 %2292 }
 0x602   : > { %v2313_v31 = vmul.f32 0.03125, %v2296_v25  ;;  %v2312_v50 = vmul.f32 0.03125, %v2293_v33  ;;  %3214 = vmatprep.subr.bf16.mxu0 %v3213_v12  ;;  %v2332_v25 = vld [vmem:[%s4283_s25 + $0x30] sm:$0xff]  ;;  %s2590_s25 = scalar_lea.sflag [#allocation5], %s4190_s30 }
 0x604   : > { %v3217_v51 = vpack.c.bf16 %v2313_v31, %v2312_v50 }
 0x605   : > { %v2302_v49 = vpop.xlane.xlu1 %2301  ;;  %3216 = vmatpush3.bf16.msra.mxu0 %v3213_v12  ;;  %v2299_v35 = vpop.xlane.xlu0 %2298 }
 0x606   : > { %v2315_v54 = vmul.f32 0.03125, %v2302_v49  ;;  %v2314_v56 = vmul.f32 0.03125, %v2299_v35  ;;  %3218 = vmatprep.subr.bf16.mxu0 %v3217_v51 }
 0x608   : > { %v3221_v57 = vpack.c.bf16 %v2315_v54, %v2314_v56 }
 0x609   : > { %v2308_v61 = vpop.xlane.xlu1 %2307  ;;  %3220 = vmatpush3.bf16.msra.mxu0 %v3217_v51  ;;  %v2305_v20 = vpop.xlane.xlu0 %2304 }
 0x60a   : > { %v2317_v6 = vmul.f32 0.03125, %v2308_v61  ;;  %v2316_v13 = vmul.f32 0.03125, %v2305_v20  ;;  %3222 = vmatprep.subr.bf16.mxu0 %v3221_v57 }
 0x60c   : > { %v3225_v21 = vpack.c.bf16 %v2317_v6, %v2316_v13 }
 0x60d   : > { %3224 = vmatpush3.bf16.msra.mxu0 %v3221_v57 }
 0x60e   : > { %3226 = vmatprep.subr.bf16.mxu0 %v3225_v21 }
 0x611   : > { %3228 = vmatpush3.bf16.msra.mxu0 %v3225_v21 }
 0x614   : > { %3171 = vmatmul.mubr.f32.vlgmr.msra.gmra.mrb[26].mxu0 %v2319_v15 }
 0x615   : > { %3173 = vmatprep.mubr.f32.mxu0 %v2320_v0 }
 0x618   : > { %3174 = vmatmul.mubr.f32.gmra.mrb[28].mxu0 %v2321_v45 }
 0x619   : > { %3176 = vmatprep.mubr.f32.mxu0 %v2322_v63 }
 0x61c   : > { %3177 = vmatmul.mubr.f32.gmra.mrb[30].mxu0 %v2323_v52 }
 0x61d   : > { %3179 = vmatprep.mubr.f32.mxu0 %v2324_v27 }
 0x620   : > { %3180 = vmatmul.mubr.f32.gmra.mrb[32].mxu0 %v2325_v11 }
 0x6e7   : > { %v3172_v3 = vpop.f32.mrb[26].mxu0 }
 0x6e8   : > { %v2406_v4 = vadd.f32 %v3172_v3, %v2327_v38  ;;  %v2400_v5 = vpop.f32.mrb[27].mxu0 }
 0x6e9   : > { %v2401_v10 = vadd.f32 %v2400_v5, %v2326_v1 }
 0x6ea   : > { %2441 = vst.msk [vmem:[%s4291_s27 + $0x8] sm:$0xff] %vm2439_vm9, %v2406_v4  ;;  %v2449_v16 = vsub.f32 0.0, %v2406_v4 }
 0x6eb   : > { %2440 = vst.msk [vmem:[%s4291_s27] sm:$0xff] %vm2439_vm9, %v2401_v10  ;;  %v2448_v29 = vsub.f32 0.0, %v2401_v10  ;;  %v3175_v30 = vpop.f32.mrb[28].mxu0 }
 0x6ec   : > { %v2458_v43 = vmul.f32 1.442695, %v2449_v16  ;;  %v2416_v7 = vadd.f32 %v3175_v30, %v2329_v36  ;;  %v2410_v9 = vpop.f32.mrb[29].mxu0 }
 0x6ed   : > { %v2456_v32 = vmul.f32 1.442695, %v2448_v29  ;;  %v2411_v39 = vadd.f32 %v2410_v9, %v2328_v24 }
 0x6ee   : > { %3399 = vpow2.f32 %v2458_v43  ;;  %2443 = vst.msk [vmem:[%s4291_s27 + $0x18] sm:$0xff] %vm2439_vm9, %v2416_v7  ;;  %v2451_v41 = vsub.f32 0.0, %v2416_v7 }
 0x6ef   : > { %3401 = vpow2.f32 %v2456_v32  ;;  %2442 = vst.msk [vmem:[%s4291_s27 + $0x10] sm:$0xff] %vm2439_vm9, %v2411_v39  ;;  %v2450_v22 = vsub.f32 0.0, %v2411_v39  ;;  %v3178_v48 = vpop.f32.mrb[30].mxu0 }
 0x6f0   : > { %v2462_v28 = vmul.f32 1.442695, %v2451_v41  ;;  %v2426_v40 = vadd.f32 %v3178_v48, %v2331_v23  ;;  %v2420_v62 = vpop.f32.mrb[31].mxu0 }
 0x6f1   : > { %v2460_v26 = vmul.f32 1.442695, %v2450_v22  ;;  %v2421_v18 = vadd.f32 %v2420_v62, %v2330_v42 }
 0x6f2   : > { %3403 = vpow2.f32 %v2462_v28  ;;  %2445 = vst.msk [vmem:[%s4291_s27 + $0x28] sm:$0xff] %vm2439_vm9, %v2426_v40  ;;  %v2453_v12 = vsub.f32 0.0, %v2426_v40 }
 0x6f3   : > { %3405 = vpow2.f32 %v2460_v26  ;;  %2444 = vst.msk [vmem:[%s4291_s27 + $0x20] sm:$0xff] %vm2439_vm9, %v2421_v18  ;;  %v2452_v33 = vsub.f32 0.0, %v2421_v18  ;;  %v3181_v31 = vpop.f32.mrb[32].mxu0 }
 0x6f4   : > { %v2466_v50 = vmul.f32 1.442695, %v2453_v12  ;;  %v2436_v51 = vadd.f32 %v3181_v31, %v2333_v19  ;;  %v2430_v49 = vpop.f32.mrb[33].mxu0 }
 0x6f5   : > { %v2464_v35 = vmul.f32 1.442695, %v2452_v33  ;;  %v2431_v54 = vadd.f32 %v2430_v49, %v2332_v25 }
 0x6f6   : > { %3407 = vpow2.f32 %v2466_v50  ;;  %2447 = vst.msk [vmem:[%s4291_s27 + $0x38] sm:$0xff] %vm2439_vm9, %v2436_v51  ;;  %v2455_v56 = vsub.f32 0.0, %v2436_v51 }
 0x6f7   : > { %2446 = vst.msk [vmem:[%s4291_s27 + $0x30] sm:$0xff] %vm2439_vm9, %v2431_v54  ;;  %3409 = vpow2.f32 %v2464_v35  ;;  %v2454_v21 = vsub.f32 0.0, %v2431_v54  ;;  %s3435_s27 = sshll.u32 %s3532_s0, 4  ;;  %s3436_s27 = int_to_ptr.vmem [resolvable:$false] %s3435_s27 }
 0x6f8   : > { %v3400_v57 = vpop.eup %3399  ;;  %v2470_v61 = vmul.f32 1.442695, %v2455_v56  ;;  %s3437_s3 = scalar_lea.vmem %s3436_s27, 32  ;;  %p3438_p0 = scmp.lt.s32.totalorder %s2624_s16, %s3436_s27 }
 0x6f9   : > { %v3402_v20 = vpop.eup %3401  ;;  %v2473_v6 = vadd.f32 1.0, %v3400_v57  ;;  %v2468_v63 = vmul.f32 1.442695, %v2454_v21  ;;  %p3439_p1 = scmp.lt.s32.totalorder %s3437_s3, %s3431_s1 }
 0x6fa   : > { %v2472_v13 = vadd.f32 1.0, %v3402_v20  ;;  %3411 = vpow2.f32 %v2470_v61 }
 0x6fb   : > { %3413 = vrcp.f32 %v2473_v6  ;;  %p3440_p2 = por %p3439_p1, %p3438_p0 }
 0x6fc   : > { %v3404_v15 = vpop.eup %3403  ;;  %3415 = vrcp.f32 %v2472_v13 }
 0x6fd   : > { %v3406_v0 = vpop.eup %3405  ;;  %v2475_v45 = vadd.f32 1.0, %v3404_v15  ;;  %p3441_p3 = pnand %p3440_p2, %p3434_p13 }
 0x6fe   : > { %v2474_v52 = vadd.f32 1.0, %v3406_v0 }
 0x6ff   : > { %3417 = vrcp.f32 %v2475_v45 }
 0x700   : > { %v3408_v27 = vpop.eup %3407  ;;  %3419 = vpow2.f32 %v2468_v63 }
 0x701   : > { %v2477_v11 = vadd.f32 1.0, %v3408_v27  ;;  %v3410_v38 = vpop.eup %3409  ;;  %3421 = vrcp.f32 %v2474_v52 }
 0x702   : > { %v2476_v5 = vadd.f32 1.0, %v3410_v38 }
 0x703   : > { %3423 = vrcp.f32 %v2477_v11 }
 0x704   : > { %v3412_v1 = vpop.eup %3411  ;;  %3425 = vrcp.f32 %v2476_v5 }
 0x705   : > { %v3414_v3 = vpop.eup %3413  ;;  %v2479_v36 = vadd.f32 1.0, %v3412_v1 }
 0x706   : > { %v3416_v4 = vpop.eup %3415  ;;  %2495 = vperm.xlu1 %3354, %v3414_v3  }
 0x707   : > { %2490 = vperm.xlu0 %3355, %v3416_v4   ;;  %3427 = vrcp.f32 %v2479_v36 }
 0x709   : > { %v3418_v10 = vpop.eup %3417 }
 0x70a   : > { %2505 = vperm.xlu1 %3354, %v3418_v10   ;;  %v3420_v16 = vpop.eup %3419 }
 0x70b   : > { %2550 = vrot.lane.b32.xlu0 %v3761_v46, %s4465_s2  ;;  %v3422_v24 = vpop.eup %3421  ;;  %v2478_v30 = vadd.f32 1.0, %v3420_v16 }
 0x70d   : > { %v3424_v29 = vpop.eup %3423  ;;  %3429 = vrcp.f32 %v2478_v30 }
 0x70e   : > { %2500 = vperm.xlu1 %3354, %v3422_v24   ;;  %v3426_v43 = vpop.eup %3425 }
 0x70f   : > { %2554 = vrot.lane.b32.xlu0 %v3808_v14, %s4465_s2 }
 0x711   : > { %v3428_v46 = vpop.eup %3427 }
 0x712   : > { %2515 = vperm.xlu1 %3354, %v3424_v29  }
 0x713   : > { %2558 = vrot.lane.b32.xlu0 %v3855_v55, %s4465_s2 }
 0x716   : > { %2510 = vperm.xlu1 %3354, %v3426_v43  }
 0x717   : > { %v3430_v7 = vpop.eup %3429 }
 0x71a   : > { %2525 = vperm.xlu1 %3354, %v3428_v46  }
 0x71e   : > { %2520 = vperm.xlu1 %3354, %v3430_v7  }
 0x722   : > { %2548 = vrot.lane.b32.xlu1 %v3748_v34, %s4465_s2 }
 0x726   : > { %2552 = vrot.lane.b32.xlu1 %v3790_v2, %s4465_s2 }
 0x72a   : > { %2556 = vrot.lane.b32.xlu1 %v3843_v44, %s4465_s2 }
 0x72b   : > { %3444 = shalt.err (!%p3441_p3)
}
 0x72c   : > { %s3445_s2 = scalar_lea.hbm %s4331_s23, 16  ;;  %s3449_s17 = scalar_lea.hbm %s4444_s14, 32 }
 0x72d   : > { %p3446_p4 = scmp.ne.s32.totalorder %s4331_s23, %s3445_s2  ;;  %p3450_p9 = scmp.lt.u32.totalorder %s4331_s23, %s4444_s14 }
 0x72e   : > { %p3451_p10 = scmp.lt.u32.totalorder %s3449_s17, %s3445_s2  ;;  %p3453_p12 = scmp.lt.u32.totalorder %s3445_s2, %s4331_s23 }
 0x72f   : > { %p3447_p7 = pnand %p3446_p4, %p3654_p5 }
 0x730   : > { %p3452_p11 = por %p3451_p10, %p3450_p9 }
 0x731   : > { %p3448_p8 = pneg %p3447_p7 }
 0x732   : > { %p3454_p13 = por %p3453_p12, %p3452_p11 }
 0x734   : > { %p3455_p0 = pnand %p3454_p13, %p3448_p8 }
 0x736   : > { %3458 = shalt.err (!%p3455_p0)
}
 0x737   : > { %3304 = dma.vmem_to_hbm [thread:$0]  (%p3654_p5), %s2624_s16, 16, %s4331_s23, %s2590_s25   ;;  %v2545_v34 = vpop.permute.xlu1 %2544  ;;  %v2547_v2 = vpop.permute.xlu0 %2546 }
 0x738   : > { %s2763_s3 = sshll.u32 %s4190_s30, 6  ;;  %s2895_s23 = sshll.u32 %s3637_s22, 10 }
 0x739   : > { %s4356_s1 = scalar_lea.vmem [#allocation2], %s2763_s3  ;;  %s4383_s2 = scalar_lea.hbm %s4443_s13, %s2895_s23 }
 0x73a   : > { %s2607_s16 = sshll.u32 %s4356_s1, 4  ;;  %s2585_s22 = scalar_lea.sflag [#allocation3], %s4190_s30  ;;  %s4385_s16 = int_to_ptr.vmem [resolvable:$true] %s2607_s16 }
 0x73b   : > { %s3459_s26 = scalar_lea.vmem %s4385_s16, 1024  ;;  %s3533_s24 = smov [#allocation2]  }
 0x73c   : > { %p3460_p1 = scmp.ne.s32.totalorder %s4385_s16, %s3459_s26  ;;  %s3463_s17 = sshll.u32 %s3533_s24, 4  ;;  %s3464_s17 = int_to_ptr.vmem [resolvable:$false] %s3463_s17 }
 0x73d   : > { %s3465_s20 = scalar_lea.vmem %s3464_s17, 2048  ;;  %p3466_p4 = scmp.lt.s32.totalorder %s4385_s16, %s3464_s17 }
 0x73e   : > { %p3461_p2 = pnand %p3460_p1, %p3654_p5  ;;  %p3467_p7 = scmp.lt.s32.totalorder %s3465_s20, %s3459_s26 }
 0x740   : > { %p3462_p3 = pneg %p3461_p2  ;;  %p3468_p8 = por %p3467_p7, %p3466_p4 }
 0x742   : > { %p3469_p9 = pnand %p3468_p8, %p3462_p3 }
 0x785   : > { %v2496_v14 = vpop.permute.xlu1 %2495 }
 0x786   : > { %v2529_v44 = vmul.f32 %v2496_v14, %v4221_v53  ;;  %v2491_v55 = vpop.permute.xlu0 %2490 }
 0x787   : > { %v2528_v9 = vmul.f32 %v2491_v55, %v4199_v37 }
 0x788   : > { %v2569_v32 = vadd.f32 %v2547_v2, %v2529_v44 }
 0x789   : > { %v2568_v39 = vadd.f32 %v2545_v34, %v2528_v9  ;;  %v2506_v23 = vpop.permute.xlu1 %2505 }
 0x78a   : > { %2577 = vst.msk [vmem:[%s4356_s1 + $0x8] sm:$0xff] %vm899_vm4, %v2569_v32  ;;  %v2531_v41 = vmul.f32 %v2506_v23, %v4218_v8  ;;  %v2551_v42 = vpop.permute.xlu0 %2550 }
 0x78b   : > { %2576 = vst.msk [vmem:[%s4356_s1] sm:$0xff] %vm899_vm4, %v2568_v39 }
 0x78c   : > { %v2571_v53 = vadd.f32 %v2551_v42, %v2531_v41 }
 0x78d   : > { %v2501_v22 = vpop.permute.xlu1 %2500 }
 0x78e   : > { %2579 = vst.msk [vmem:[%s4356_s1 + $0x18] sm:$0xff] %vm899_vm4, %v2571_v53  ;;  %v2555_v28 = vpop.permute.xlu0 %2554  ;;  %v2530_v25 = vmul.f32 %v2501_v22, %v4196_v17 }
 0x791   : > { %v2516_v37 = vpop.permute.xlu1 %2515 }
 0x792   : > { %v2533_v48 = vmul.f32 %v2516_v37, %v4202_v47  ;;  %v2559_v18 = vpop.permute.xlu0 %2558 }
 0x794   : > { %v2573_v40 = vadd.f32 %v2555_v28, %v2533_v48 }
 0x795   : > { %v2511_v62 = vpop.permute.xlu1 %2510 }
 0x796   : > { %2581 = vst.msk [vmem:[%s4356_s1 + $0x28] sm:$0xff] %vm899_vm4, %v2573_v40  ;;  %v2532_v31 = vmul.f32 %v2511_v62, %v4205_v58 }
 0x799   : > { %v2526_v8 = vpop.permute.xlu1 %2525 }
 0x79a   : > { %v2535_v26 = vmul.f32 %v2526_v8, %v4208_v59 }
 0x79c   : > { %v2575_v19 = vadd.f32 %v2559_v18, %v2535_v26 }
 0x79d   : > { %v2521_v12 = vpop.permute.xlu1 %2520 }
 0x79e   : > { %2583 = vst.msk [vmem:[%s4356_s1 + $0x38] sm:$0xff] %vm899_vm4, %v2575_v19  ;;  %v2534_v59 = vmul.f32 %v2521_v12, %v4211_v60 }
 0x7a1   : > { %v2549_v47 = vpop.permute.xlu1 %2548 }
 0x7a2   : > { %v2570_v33 = vadd.f32 %v2549_v47, %v2530_v25 }
 0x7a4   : > { %2578 = vst.msk [vmem:[%s4356_s1 + $0x10] sm:$0xff] %vm899_vm4, %v2570_v33 }
 0x7a5   : > { %v2553_v50 = vpop.permute.xlu1 %2552 }
 0x7a6   : > { %v2572_v51 = vadd.f32 %v2553_v50, %v2532_v31 }
 0x7a8   : > { %2580 = vst.msk [vmem:[%s4356_s1 + $0x20] sm:$0xff] %vm899_vm4, %v2572_v51 }
 0x7a9   : > { %v2557_v49 = vpop.permute.xlu1 %2556 }
 0x7aa   : > { %v2574_v17 = vadd.f32 %v2557_v49, %v2534_v59 }
 0x7ac   : > { %2582 = vst.msk [vmem:[%s4356_s1 + $0x30] sm:$0xff] %vm899_vm4, %v2574_v17 }
 0x7ad   : > { %3472 = shalt.err (!%p3469_p9)
}
 0x7ae   : > { %s3473_s0 = scalar_lea.hbm %s4383_s2, 1024  ;;  %s3477_s23 = scalar_lea.hbm %s4443_s13, 2048 }
 0x7af   : > { %p3474_p10 = scmp.ne.s32.totalorder %s4383_s2, %s3473_s0  ;;  %p3478_p13 = scmp.lt.u32.totalorder %s4383_s2, %s4443_s13 }
 0x7b0   : > { %p3479_p0 = scmp.lt.u32.totalorder %s3477_s23, %s3473_s0  ;;  %p3481_p2 = scmp.lt.u32.totalorder %s3473_s0, %s4383_s2 }
 0x7b1   : > { %p3475_p11 = pnand %p3474_p10, %p3654_p5 }
 0x7b2   : > { %p3480_p1 = por %p3479_p0, %p3478_p13 }
 0x7b3   : > { %p3476_p12 = pneg %p3475_p11 }
 0x7b4   : > { %p3482_p3 = por %p3481_p2, %p3480_p1 }
 0x7b6   : > { %p3483_p4 = pnand %p3482_p3, %p3476_p12 }
 0x7b8   : > { %3486 = shalt.err (!%p3483_p4)
}
 0x7b9   : > { %s3534_s26 = smov 128   ;;  %s3535_s24 = smov 8  }
 0x7ba   : > { %3303 = dma.vmem_to_hbm [thread:$0]  (%p3654_p5), %s4385_s16, 1024, %s4383_s2, %s2585_s22, %s3534_s26, %s3534_s26, %s3535_s24  }
 0x7bb PF: > { %p3314_p7 = scmp.ge.s32.totalorder %s3525_s21, 2  ;;  %s2638_s17 = sand.u32 1, %s3513_s18  }
 0x7bc   : > { %s2639_s20 = scalar_lea.sflag [#allocation3], %s2638_s17 }
 0x7bd   : > { %p3308_p8 = pnand %p3314_p7, %p3658_p6 }
 0x7bf   : > { %3504 = dma.done.wait (!%p3308_p8), %s2639_s20, 1024  }
 0x7c0   : > { %3506 = vsyncadd (!%p3308_p8), %s2639_s20, 4294966272  ;;  %s2648_s0 = scalar_lea.sflag [#allocation5], %s2638_s17 }
 0x7c1   : > { %3508 = dma.done.wait (!%p3308_p8), %s2648_s0, 16  }
 0x7c2   : > { %3510 = vsyncadd (!%p3308_p8), %s2648_s0, 4294967280  ;;  %s4467_s21 = sld [smem:[#allocation9_spill]]  ;;  %s4468_s3 = sld [smem:[#allocation8_spill]] }
 0x7c3   : > { %s4469_s20 = sld [smem:[#allocation10_spill]]  ;;  %s4470_s18 = smov %s3517_s19 }
 0x7c8   : > { %p29_p5 = scmp.ge.s32.totalorder %s4467_s21, 4   ;;  %s4471_s19 = smov %s4468_s3 }
 0x7ca   :  { %31 = sbr.rel (!%p29_p5) target bundleno = 10 (0xa), region = 150 }
 0x7d1   :  { %2660 = vsyncpa [#allocation3], 1 }
 0x7d2   :  { %2662 = vsyncpa [#allocation3 + $0x1], 1 }
 0x7d3   :  { %2663 = vsyncpa [#allocation5], 1 }
 0x7d4   :  { %2665 = vsyncpa [#allocation5 + $0x1], 1 }

</bundles_post_ra>
